<compile_context>
chip_gen: v5e
topology: v5e:2x2
jax: 0.10.0
libtpu: 0.0.40
codegen_flags: <defaults>
</compile_context>

<pallas_src>
import functools

import jax
import jax.numpy as jnp
from jax.experimental import pallas as pl
from jax.experimental.pallas import tpu as pltpu


def lstm_chunk_kernel(x_ref, wih_ref, whh_ref, bias_ref, h_out_ref,
                      xw_scr, h_scr, c_scr, *, seq_len):
    """One time-chunk of the LSTM recurrence.

    x_ref:    (Tc, Bp, I)   time-major input chunk (streamed, double-buffered)
    wih_ref:  (I, 4H)       W_ih^T, VMEM-resident across the grid
    whh_ref:  (H, 4H)       W_hh^T, VMEM-resident across the grid
    bias_ref: (1, 4H)       b_ih + b_hh
    h_out:    (Bp, H)       final hidden state (written on the last chunk only)
    xw_scr:   (Tc*Bp, 4H)   per-chunk fused input projection
    h_scr/c_scr: (Bp, H)    recurrent carry, persists across grid iterations
    """
    chunk = pl.program_id(0)
    n_chunks = pl.num_programs(0)
    Tc, Bp, I = x_ref.shape
    H = whh_ref.shape[0]

    @pl.when(chunk == 0)
    def _():
        h_scr[...] = jnp.zeros_like(h_scr)
        c_scr[...] = jnp.zeros_like(c_scr)

    # Fused input projection for the whole chunk: ONE big MXU matmul, bias folded in.
    x_flat = x_ref[...].reshape(Tc * Bp, I)
    xw_scr[...] = (
        jnp.dot(x_flat, wih_ref[...], preferred_element_type=jnp.float32) + bias_ref[...]
    )

    def step(t, carry):
        h, c = carry
        # Only one MXU matmul on the serial critical path per step.
        row = pl.multiple_of(t * Bp, Bp)
        gates = xw_scr[pl.ds(row, Bp), :] + jnp.dot(
            h, whh_ref[...], preferred_element_type=jnp.float32)
        # NOTE: with H a multiple of 128 these per-gate slices are lane-dense vregs;
        # at H=64 they are sub-vreg slices (negligible at this size).
        i_g = jax.nn.sigmoid(gates[:, 0 * H:1 * H])
        f_g = jax.nn.sigmoid(gates[:, 1 * H:2 * H])
        g_g = jnp.tanh(gates[:, 2 * H:3 * H])
        o_g = jax.nn.sigmoid(gates[:, 3 * H:4 * H])
        c_new = f_g * c + i_g * g_g
        h_new = o_g * jnp.tanh(c_new)
        # Mask steps that are only time-padding (T rounded up to a multiple of Tc).
        valid = (chunk * Tc + t) < seq_len
        h_new = jnp.where(valid, h_new, h)
        c_new = jnp.where(valid, c_new, c)
        return h_new, c_new

    # Capped unroll: cross-step visibility for the scheduler without exploding bundles/vregs.
    h_fin, c_fin = jax.lax.fori_loop(0, Tc, step, (h_scr[...], c_scr[...]),
                                     unroll=min(Tc, 8))
    h_scr[...] = h_fin
    c_scr[...] = c_fin

    @pl.when(chunk == n_chunks - 1)
    def _():
        h_out_ref[...] = h_fin.astype(h_out_ref.dtype)


@functools.partial(jax.jit, static_argnames=("hidden_size",))
def shared_encoder_forward(x, w_ih, w_hh, b_ih, b_hh, *, hidden_size):
    """x: (B, T, I) float32, PyTorch batch_first layout. Returns final hidden state (B, H)."""
    B, T, I = x.shape
    H = hidden_size
    Bp = max(8, ((B + 7) // 8) * 8)   # pad batch to the f32 sublane width
    Tc = min(T, 128)                   # time-chunk size; bounds VMEM, fits v7x's 64 MiB budget
    n_chunks = pl.cdiv(T, Tc)
    T_pad = n_chunks * Tc

    # Layout plumbing on the SMALL tensor only (one-time transpose/pad of x); the big
    # (T, Bp, 4H) projection is computed inside the kernel now.
    x_tm = jnp.transpose(x.astype(jnp.float32), (1, 0, 2))        # (T, B, I)
    x_tm = jnp.pad(x_tm, ((0, T_pad - T), (0, Bp - B), (0, 0)))   # (T_pad, Bp, I)

    wih_t = jnp.transpose(w_ih.astype(jnp.float32), (1, 0))       # (I, 4H)
    whh_t = jnp.transpose(w_hh.astype(jnp.float32), (1, 0))       # (H, 4H)
    bias = (b_ih + b_hh).astype(jnp.float32).reshape(1, 4 * H)    # (1, 4H)

    kernel = functools.partial(lstm_chunk_kernel, seq_len=T)

    h_out = pl.pallas_call(
        kernel,
        out_shape=jax.ShapeDtypeStruct((Bp, H), jnp.float32),
        grid_spec=pltpu.PrefetchScalarGridSpec(
            num_scalar_prefetch=0,
            grid=(n_chunks,),
            in_specs=[
                pl.BlockSpec((Tc, Bp, I), lambda c: (c, 0, 0)),   # x chunks, streamed
                pl.BlockSpec((I, 4 * H), lambda c: (0, 0)),       # W_ih^T, resident
                pl.BlockSpec((H, 4 * H), lambda c: (0, 0)),       # W_hh^T, resident
                pl.BlockSpec((1, 4 * H), lambda c: (0, 0)),       # bias, resident
            ],
            out_specs=pl.BlockSpec((Bp, H), lambda c: (0, 0)),    # final hidden, resident
            scratch_shapes=[
                pltpu.VMEM((Tc * Bp, 4 * H), jnp.float32),   # per-chunk input projection
                pltpu.VMEM((Bp, H), jnp.float32),            # h carry
                pltpu.VMEM((Bp, H), jnp.float32),            # c carry
            ],
        ),
        compiler_params=pltpu.CompilerParams(
            dimension_semantics=("arbitrary",),   # serial recurrence over time chunks
        ),
    )(x_tm, wih_t, whh_t, bias)

    return h_out[:B]


def shared_encoder_reference(x, w_ih, w_hh, b_ih, b_hh, hidden_size):
    """Pure-JAX reference matching torch.nn.LSTM (batch_first) final hidden."""
    B, T, I = x.shape
    H = hidden_size

    def step(carry, x_t):
        h, c = carry
        gates = x_t @ w_ih.T + b_ih + h @ w_hh.T + b_hh
        i_g = jax.nn.sigmoid(gates[:, 0 * H:1 * H])
        f_g = jax.nn.sigmoid(gates[:, 1 * H:2 * H])
        g_g = jnp.tanh(gates[:, 2 * H:3 * H])
        o_g = jax.nn.sigmoid(gates[:, 3 * H:4 * H])
        c_new = f_g * c + i_g * g_g
        h_new = o_g * jnp.tanh(c_new)
        return (h_new, c_new), None

    h0 = jnp.zeros((B, H), jnp.float32)
    c0 = jnp.zeros((B, H), jnp.float32)
    (h_final, _), _ = jax.lax.scan(step, (h0, c0), jnp.transpose(x, (1, 0, 2)))
    return h_final


if __name__ == "__main__":
    # Small shapes consistent with the module's forward: (batch, seq, input_size), hidden_size=64.
    B, T, I, H = 2, 8, 16, 64

    key = jax.random.PRNGKey(0)
    kx, k1, k2, k3, k4 = jax.random.split(key, 5)

    x = jax.random.normal(kx, (B, T, I), dtype=jnp.float32)

    # Deterministic parameter init, same scheme as torch.nn.LSTM: U(-1/sqrt(H), 1/sqrt(H)).
    bound = 1.0 / jnp.sqrt(jnp.float32(H))
    w_ih = jax.random.uniform(k1, (4 * H, I), jnp.float32, -bound, bound)
    w_hh = jax.random.uniform(k2, (4 * H, H), jnp.float32, -bound, bound)
    b_ih = jax.random.uniform(k3, (4 * H,), jnp.float32, -bound, bound)
    b_hh = jax.random.uniform(k4, (4 * H,), jnp.float32, -bound, bound)

    out = shared_encoder_forward(x, w_ih, w_hh, b_ih, b_hh, hidden_size=H)
    out = jax.block_until_ready(out)

    ref = shared_encoder_reference(x, w_ih, w_hh, b_ih, b_hh, H)
    assert out.shape == (B, H), out.shape
    assert jnp.allclose(out, ref, atol=1e-5, rtol=1e-5), float(jnp.max(jnp.abs(out - ref)))

    print("KERNEL_OK")
</pallas_src>

<mosaic_0001>
module attributes {stable_mosaic.version = 11 : i64} {
  func.func @lstm_chunk_kernel(%arg0: i32, %arg1: memref<8x8x16xf32, #tpu.memory_space<vmem>>, %arg2: memref<16x256xf32, #tpu.memory_space<vmem>>, %arg3: memref<64x256xf32, #tpu.memory_space<vmem>>, %arg4: memref<1x256xf32, #tpu.memory_space<vmem>>, %arg5: memref<8x64xf32, #tpu.memory_space<vmem>>, %arg6: memref<64x256xf32, #tpu.memory_space<vmem>>, %arg7: memref<8x64xf32, #tpu.memory_space<vmem>>, %arg8: memref<8x64xf32, #tpu.memory_space<vmem>>) attributes {dimension_semantics = [#tpu.dimension_semantics<arbitrary>], iteration_bounds = array<i64: 1>, scalar_prefetch = 0 : i64, scratch_operands = 3 : i64, tpu.core_type = #tpu.core_type<tc>, window_params = [{transform_indices = @transform_0, window_bounds = array<i64: 8, 8, 16>}, {pipeline_mode = #tpu.pipeline_mode<synchronous>, transform_indices = @transform_1, window_bounds = array<i64: 16, 256>}, {pipeline_mode = #tpu.pipeline_mode<synchronous>, transform_indices = @transform_2, window_bounds = array<i64: 64, 256>}, {pipeline_mode = #tpu.pipeline_mode<synchronous>, transform_indices = @transform_3, window_bounds = array<i64: 1, 256>}, {pipeline_mode = #tpu.pipeline_mode<synchronous>, transform_indices = @transform_4, window_bounds = array<i64: 8, 64>}]} {
    %c0_i32 = arith.constant 0 : i32
    %0 = arith.cmpi eq, %arg0, %c0_i32 : i32
    %1 = arith.extui %0 : i1 to i32
    %c0_i32_0 = arith.constant 0 : i32
    %2 = arith.cmpi ne, %1, %c0_i32_0 : i32
    scf.if %2 {
      %cst_100 = arith.constant 0.000000e+00 : f32
      %314 = vector.broadcast %cst_100 : f32 to vector<8x64xf32>
      %c0_101 = arith.constant 0 : index
      %c0_102 = arith.constant 0 : index
      %315 = vector.load %arg7[%c0_101, %c0_102] : memref<8x64xf32, #tpu.memory_space<vmem>>, vector<8x64xf32>
      tpu.vector_store %arg7[%c0_101, %c0_102], %314 {strides = array<i32>} : memref<8x64xf32, #tpu.memory_space<vmem>>, vector<8x64xf32>,
      %cst_103 = arith.constant 0.000000e+00 : f32
      %316 = vector.broadcast %cst_103 : f32 to vector<8x64xf32>
      %c0_104 = arith.constant 0 : index
      %c0_105 = arith.constant 0 : index
      %317 = vector.load %arg8[%c0_104, %c0_105] : memref<8x64xf32, #tpu.memory_space<vmem>>, vector<8x64xf32>
      tpu.vector_store %arg8[%c0_104, %c0_105], %316 {strides = array<i32>} : memref<8x64xf32, #tpu.memory_space<vmem>>, vector<8x64xf32>,
    } else {
    }
    %c0 = arith.constant 0 : index
    %c0_1 = arith.constant 0 : index
    %c0_2 = arith.constant 0 : index
    %3 = vector.load %arg1[%c0, %c0_1, %c0_2] : memref<8x8x16xf32, #tpu.memory_space<vmem>>, vector<8x8x16xf32>
    %4 = vector.shape_cast %3 : vector<8x8x16xf32> to vector<64x16xf32>
    %c0_3 = arith.constant 0 : index
    %c0_4 = arith.constant 0 : index
    %5 = vector.load %arg2[%c0_3, %c0_4] : memref<16x256xf32, #tpu.memory_space<vmem>>, vector<16x256xf32>
    %cst = arith.constant dense<0.000000e+00> : vector<64x256xf32>
    %6 = tpu.matmul %4, %5, %cst {dimension_numbers = #tpu.dot_dimension_numbers<[1], [0], [0], [1], [0, 0, 1, 1], [], []>} : vector<64x16xf32>, vector<16x256xf32>, vector<64x256xf32> -> vector<64x256xf32>
    %c0_5 = arith.constant 0 : index
    %c0_6 = arith.constant 0 : index
    %7 = vector.load %arg4[%c0_5, %c0_6] : memref<1x256xf32, #tpu.memory_space<vmem>>, vector<1x256xf32>
    %8 = vector.broadcast %7 : vector<1x256xf32> to vector<64x256xf32>
    %9 = arith.addf %6, %8 : vector<64x256xf32>
    %c0_7 = arith.constant 0 : index
    %c0_8 = arith.constant 0 : index
    %10 = vector.load %arg6[%c0_7, %c0_8] : memref<64x256xf32, #tpu.memory_space<vmem>>, vector<64x256xf32>
    tpu.vector_store %arg6[%c0_7, %c0_8], %9 {strides = array<i32>} : memref<64x256xf32, #tpu.memory_space<vmem>>, vector<64x256xf32>,
    %c0_9 = arith.constant 0 : index
    %c0_10 = arith.constant 0 : index
    %11 = vector.load %arg7[%c0_9, %c0_10] : memref<8x64xf32, #tpu.memory_space<vmem>>, vector<8x64xf32>
    %c0_11 = arith.constant 0 : index
    %c0_12 = arith.constant 0 : index
    %12 = vector.load %arg8[%c0_11, %c0_12] : memref<8x64xf32, #tpu.memory_space<vmem>>, vector<8x64xf32>
    %c0_i32_13 = arith.constant 0 : i32
    %c8_i32 = arith.constant 8 : i32
    %13 = arith.muli %c0_i32_13, %c8_i32 : i32
    %14 = tpu.assume_multiple %13, 8 : i32
    %15 = arith.index_cast %14 : i32 to index
    %c0_14 = arith.constant 0 : index
    %16 = vector.load %arg6[%15, %c0_14] : memref<64x256xf32, #tpu.memory_space<vmem>>, vector<8x256xf32>
    %c0_15 = arith.constant 0 : index
    %c0_16 = arith.constant 0 : index
    %17 = vector.load %arg3[%c0_15, %c0_16] : memref<64x256xf32, #tpu.memory_space<vmem>>, vector<64x256xf32>
    %cst_17 = arith.constant dense<0.000000e+00> : vector<8x256xf32>
    %18 = tpu.matmul %11, %17, %cst_17 {dimension_numbers = #tpu.dot_dimension_numbers<[1], [0], [0], [1], [0, 0, 1, 1], [], []>} : vector<8x64xf32>, vector<64x256xf32>, vector<8x256xf32> -> vector<8x256xf32>
    %19 = arith.addf %16, %18 : vector<8x256xf32>
    %20 = vector.extract_strided_slice %19 {offsets = [0, 0], sizes = [8, 64], strides = [1, 1]} : vector<8x256xf32> to vector<8x64xf32>
    %21 = arith.negf %20 : vector<8x64xf32>
    %22 = math.exp %21 : vector<8x64xf32>
    %cst_18 = arith.constant 1.000000e+00 : f32
    %23 = vector.broadcast %cst_18 : f32 to vector<8x64xf32>
    %24 = arith.addf %23, %22 : vector<8x64xf32>
    %25 = arith.divf %23, %24 : vector<8x64xf32>
    %26 = vector.extract_strided_slice %19 {offsets = [0, 64], sizes = [8, 64], strides = [1, 1]} : vector<8x256xf32> to vector<8x64xf32>
    %27 = arith.negf %26 : vector<8x64xf32>
    %28 = math.exp %27 : vector<8x64xf32>
    %cst_19 = arith.constant 1.000000e+00 : f32
    %29 = vector.broadcast %cst_19 : f32 to vector<8x64xf32>
    %30 = arith.addf %29, %28 : vector<8x64xf32>
    %31 = arith.divf %29, %30 : vector<8x64xf32>
    %32 = vector.extract_strided_slice %19 {offsets = [0, 128], sizes = [8, 64], strides = [1, 1]} : vector<8x256xf32> to vector<8x64xf32>
    %33 = math.tanh %32 : vector<8x64xf32>
    %34 = vector.extract_strided_slice %19 {offsets = [0, 192], sizes = [8, 64], strides = [1, 1]} : vector<8x256xf32> to vector<8x64xf32>
    %35 = arith.negf %34 : vector<8x64xf32>
    %36 = math.exp %35 : vector<8x64xf32>
    %cst_20 = arith.constant 1.000000e+00 : f32
    %37 = vector.broadcast %cst_20 : f32 to vector<8x64xf32>
    %38 = arith.addf %37, %36 : vector<8x64xf32>
    %39 = arith.divf %37, %38 : vector<8x64xf32>
    %40 = arith.mulf %31, %12 : vector<8x64xf32>
    %41 = arith.mulf %25, %33 : vector<8x64xf32>
    %42 = arith.addf %40, %41 : vector<8x64xf32>
    %43 = math.tanh %42 : vector<8x64xf32>
    %44 = arith.mulf %39, %43 : vector<8x64xf32>
    %c8_i32_21 = arith.constant 8 : i32
    %45 = arith.muli %arg0, %c8_i32_21 : i32
    %46 = arith.addi %45, %c0_i32_13 : i32
    %c8_i32_22 = arith.constant 8 : i32
    %47 = arith.cmpi slt, %46, %c8_i32_22 : i32
    %48 = arith.select %47, %44, %11 : vector<8x64xf32>
    %49 = arith.select %47, %42, %12 : vector<8x64xf32>
    %c1_i32 = arith.constant 1 : i32
    %c8_i32_23 = arith.constant 8 : i32
    %50 = arith.muli %c1_i32, %c8_i32_23 : i32
    %51 = tpu.assume_multiple %50, 8 : i32
    %52 = arith.index_cast %51 : i32 to index
    %c0_24 = arith.constant 0 : index
    %53 = vector.load %arg6[%52, %c0_24] : memref<64x256xf32, #tpu.memory_space<vmem>>, vector<8x256xf32>
    %c0_25 = arith.constant 0 : index
    %c0_26 = arith.constant 0 : index
    %54 = vector.load %arg3[%c0_25, %c0_26] : memref<64x256xf32, #tpu.memory_space<vmem>>, vector<64x256xf32>
    %cst_27 = arith.constant dense<0.000000e+00> : vector<8x256xf32>
    %55 = tpu.matmul %48, %54, %cst_27 {dimension_numbers = #tpu.dot_dimension_numbers<[1], [0], [0], [1], [0, 0, 1, 1], [], []>} : vector<8x64xf32>, vector<64x256xf32>, vector<8x256xf32> -> vector<8x256xf32>
    %56 = arith.addf %53, %55 : vector<8x256xf32>
    %57 = vector.extract_strided_slice %56 {offsets = [0, 0], sizes = [8, 64], strides = [1, 1]} : vector<8x256xf32> to vector<8x64xf32>
    %58 = arith.negf %57 : vector<8x64xf32>
    %59 = math.exp %58 : vector<8x64xf32>
    %cst_28 = arith.constant 1.000000e+00 : f32
    %60 = vector.broadcast %cst_28 : f32 to vector<8x64xf32>
    %61 = arith.addf %60, %59 : vector<8x64xf32>
    %62 = arith.divf %60, %61 : vector<8x64xf32>
    %63 = vector.extract_strided_slice %56 {offsets = [0, 64], sizes = [8, 64], strides = [1, 1]} : vector<8x256xf32> to vector<8x64xf32>
    %64 = arith.negf %63 : vector<8x64xf32>
    %65 = math.exp %64 : vector<8x64xf32>
    %cst_29 = arith.constant 1.000000e+00 : f32
    %66 = vector.broadcast %cst_29 : f32 to vector<8x64xf32>
    %67 = arith.addf %66, %65 : vector<8x64xf32>
    %68 = arith.divf %66, %67 : vector<8x64xf32>
    %69 = vector.extract_strided_slice %56 {offsets = [0, 128], sizes = [8, 64], strides = [1, 1]} : vector<8x256xf32> to vector<8x64xf32>
    %70 = math.tanh %69 : vector<8x64xf32>
    %71 = vector.extract_strided_slice %56 {offsets = [0, 192], sizes = [8, 64], strides = [1, 1]} : vector<8x256xf32> to vector<8x64xf32>
    %72 = arith.negf %71 : vector<8x64xf32>
    %73 = math.exp %72 : vector<8x64xf32>
    %cst_30 = arith.constant 1.000000e+00 : f32
    %74 = vector.broadcast %cst_30 : f32 to vector<8x64xf32>
    %75 = arith.addf %74, %73 : vector<8x64xf32>
    %76 = arith.divf %74, %75 : vector<8x64xf32>
    %77 = arith.mulf %68, %49 : vector<8x64xf32>
    %78 = arith.mulf %62, %70 : vector<8x64xf32>
    %79 = arith.addf %77, %78 : vector<8x64xf32>
    %80 = math.tanh %79 : vector<8x64xf32>
    %81 = arith.mulf %76, %80 : vector<8x64xf32>
    %c8_i32_31 = arith.constant 8 : i32
    %82 = arith.muli %arg0, %c8_i32_31 : i32
    %83 = arith.addi %82, %c1_i32 : i32
    %c8_i32_32 = arith.constant 8 : i32
    %84 = arith.cmpi slt, %83, %c8_i32_32 : i32
    %85 = arith.select %84, %81, %48 : vector<8x64xf32>
    %86 = arith.select %84, %79, %49 : vector<8x64xf32>
    %c2_i32 = arith.constant 2 : i32
    %c8_i32_33 = arith.constant 8 : i32
    %87 = arith.muli %c2_i32, %c8_i32_33 : i32
    %88 = tpu.assume_multiple %87, 8 : i32
    %89 = arith.index_cast %88 : i32 to index
    %c0_34 = arith.constant 0 : index
    %90 = vector.load %arg6[%89, %c0_34] : memref<64x256xf32, #tpu.memory_space<vmem>>, vector<8x256xf32>
    %c0_35 = arith.constant 0 : index
    %c0_36 = arith.constant 0 : index
    %91 = vector.load %arg3[%c0_35, %c0_36] : memref<64x256xf32, #tpu.memory_space<vmem>>, vector<64x256xf32>
    %cst_37 = arith.constant dense<0.000000e+00> : vector<8x256xf32>
    %92 = tpu.matmul %85, %91, %cst_37 {dimension_numbers = #tpu.dot_dimension_numbers<[1], [0], [0], [1], [0, 0, 1, 1], [], []>} : vector<8x64xf32>, vector<64x256xf32>, vector<8x256xf32> -> vector<8x256xf32>
    %93 = arith.addf %90, %92 : vector<8x256xf32>
    %94 = vector.extract_strided_slice %93 {offsets = [0, 0], sizes = [8, 64], strides = [1, 1]} : vector<8x256xf32> to vector<8x64xf32>
    %95 = arith.negf %94 : vector<8x64xf32>
    %96 = math.exp %95 : vector<8x64xf32>
    %cst_38 = arith.constant 1.000000e+00 : f32
    %97 = vector.broadcast %cst_38 : f32 to vector<8x64xf32>
    %98 = arith.addf %97, %96 : vector<8x64xf32>
    %99 = arith.divf %97, %98 : vector<8x64xf32>
    %100 = vector.extract_strided_slice %93 {offsets = [0, 64], sizes = [8, 64], strides = [1, 1]} : vector<8x256xf32> to vector<8x64xf32>
    %101 = arith.negf %100 : vector<8x64xf32>
    %102 = math.exp %101 : vector<8x64xf32>
    %cst_39 = arith.constant 1.000000e+00 : f32
    %103 = vector.broadcast %cst_39 : f32 to vector<8x64xf32>
    %104 = arith.addf %103, %102 : vector<8x64xf32>
    %105 = arith.divf %103, %104 : vector<8x64xf32>
    %106 = vector.extract_strided_slice %93 {offsets = [0, 128], sizes = [8, 64], strides = [1, 1]} : vector<8x256xf32> to vector<8x64xf32>
    %107 = math.tanh %106 : vector<8x64xf32>
    %108 = vector.extract_strided_slice %93 {offsets = [0, 192], sizes = [8, 64], strides = [1, 1]} : vector<8x256xf32> to vector<8x64xf32>
    %109 = arith.negf %108 : vector<8x64xf32>
    %110 = math.exp %109 : vector<8x64xf32>
    %cst_40 = arith.constant 1.000000e+00 : f32
    %111 = vector.broadcast %cst_40 : f32 to vector<8x64xf32>
    %112 = arith.addf %111, %110 : vector<8x64xf32>
    %113 = arith.divf %111, %112 : vector<8x64xf32>
    %114 = arith.mulf %105, %86 : vector<8x64xf32>
    %115 = arith.mulf %99, %107 : vector<8x64xf32>
    %116 = arith.addf %114, %115 : vector<8x64xf32>
    %117 = math.tanh %116 : vector<8x64xf32>
    %118 = arith.mulf %113, %117 : vector<8x64xf32>
    %c8_i32_41 = arith.constant 8 : i32
    %119 = arith.muli %arg0, %c8_i32_41 : i32
    %120 = arith.addi %119, %c2_i32 : i32
    %c8_i32_42 = arith.constant 8 : i32
    %121 = arith.cmpi slt, %120, %c8_i32_42 : i32
    %122 = arith.select %121, %118, %85 : vector<8x64xf32>
    %123 = arith.select %121, %116, %86 : vector<8x64xf32>
    %c3_i32 = arith.constant 3 : i32
    %c8_i32_43 = arith.constant 8 : i32
    %124 = arith.muli %c3_i32, %c8_i32_43 : i32
    %125 = tpu.assume_multiple %124, 8 : i32
    %126 = arith.index_cast %125 : i32 to index
    %c0_44 = arith.constant 0 : index
    %127 = vector.load %arg6[%126, %c0_44] : memref<64x256xf32, #tpu.memory_space<vmem>>, vector<8x256xf32>
    %c0_45 = arith.constant 0 : index
    %c0_46 = arith.constant 0 : index
    %128 = vector.load %arg3[%c0_45, %c0_46] : memref<64x256xf32, #tpu.memory_space<vmem>>, vector<64x256xf32>
    %cst_47 = arith.constant dense<0.000000e+00> : vector<8x256xf32>
    %129 = tpu.matmul %122, %128, %cst_47 {dimension_numbers = #tpu.dot_dimension_numbers<[1], [0], [0], [1], [0, 0, 1, 1], [], []>} : vector<8x64xf32>, vector<64x256xf32>, vector<8x256xf32> -> vector<8x256xf32>
    %130 = arith.addf %127, %129 : vector<8x256xf32>
    %131 = vector.extract_strided_slice %130 {offsets = [0, 0], sizes = [8, 64], strides = [1, 1]} : vector<8x256xf32> to vector<8x64xf32>
    %132 = arith.negf %131 : vector<8x64xf32>
    %133 = math.exp %132 : vector<8x64xf32>
    %cst_48 = arith.constant 1.000000e+00 : f32
    %134 = vector.broadcast %cst_48 : f32 to vector<8x64xf32>
    %135 = arith.addf %134, %133 : vector<8x64xf32>
    %136 = arith.divf %134, %135 : vector<8x64xf32>
    %137 = vector.extract_strided_slice %130 {offsets = [0, 64], sizes = [8, 64], strides = [1, 1]} : vector<8x256xf32> to vector<8x64xf32>
    %138 = arith.negf %137 : vector<8x64xf32>
    %139 = math.exp %138 : vector<8x64xf32>
    %cst_49 = arith.constant 1.000000e+00 : f32
    %140 = vector.broadcast %cst_49 : f32 to vector<8x64xf32>
    %141 = arith.addf %140, %139 : vector<8x64xf32>
    %142 = arith.divf %140, %141 : vector<8x64xf32>
    %143 = vector.extract_strided_slice %130 {offsets = [0, 128], sizes = [8, 64], strides = [1, 1]} : vector<8x256xf32> to vector<8x64xf32>
    %144 = math.tanh %143 : vector<8x64xf32>
    %145 = vector.extract_strided_slice %130 {offsets = [0, 192], sizes = [8, 64], strides = [1, 1]} : vector<8x256xf32> to vector<8x64xf32>
    %146 = arith.negf %145 : vector<8x64xf32>
    %147 = math.exp %146 : vector<8x64xf32>
    %cst_50 = arith.constant 1.000000e+00 : f32
    %148 = vector.broadcast %cst_50 : f32 to vector<8x64xf32>
    %149 = arith.addf %148, %147 : vector<8x64xf32>
    %150 = arith.divf %148, %149 : vector<8x64xf32>
    %151 = arith.mulf %142, %123 : vector<8x64xf32>
    %152 = arith.mulf %136, %144 : vector<8x64xf32>
    %153 = arith.addf %151, %152 : vector<8x64xf32>
    %154 = math.tanh %153 : vector<8x64xf32>
    %155 = arith.mulf %150, %154 : vector<8x64xf32>
    %c8_i32_51 = arith.constant 8 : i32
    %156 = arith.muli %arg0, %c8_i32_51 : i32
    %157 = arith.addi %156, %c3_i32 : i32
    %c8_i32_52 = arith.constant 8 : i32
    %158 = arith.cmpi slt, %157, %c8_i32_52 : i32
    %159 = arith.select %158, %155, %122 : vector<8x64xf32>
    %160 = arith.select %158, %153, %123 : vector<8x64xf32>
    %c4_i32 = arith.constant 4 : i32
    %c8_i32_53 = arith.constant 8 : i32
    %161 = arith.muli %c4_i32, %c8_i32_53 : i32
    %162 = tpu.assume_multiple %161, 8 : i32
    %163 = arith.index_cast %162 : i32 to index
    %c0_54 = arith.constant 0 : index
    %164 = vector.load %arg6[%163, %c0_54] : memref<64x256xf32, #tpu.memory_space<vmem>>, vector<8x256xf32>
    %c0_55 = arith.constant 0 : index
    %c0_56 = arith.constant 0 : index
    %165 = vector.load %arg3[%c0_55, %c0_56] : memref<64x256xf32, #tpu.memory_space<vmem>>, vector<64x256xf32>
    %cst_57 = arith.constant dense<0.000000e+00> : vector<8x256xf32>
    %166 = tpu.matmul %159, %165, %cst_57 {dimension_numbers = #tpu.dot_dimension_numbers<[1], [0], [0], [1], [0, 0, 1, 1], [], []>} : vector<8x64xf32>, vector<64x256xf32>, vector<8x256xf32> -> vector<8x256xf32>
    %167 = arith.addf %164, %166 : vector<8x256xf32>
    %168 = vector.extract_strided_slice %167 {offsets = [0, 0], sizes = [8, 64], strides = [1, 1]} : vector<8x256xf32> to vector<8x64xf32>
    %169 = arith.negf %168 : vector<8x64xf32>
    %170 = math.exp %169 : vector<8x64xf32>
    %cst_58 = arith.constant 1.000000e+00 : f32
    %171 = vector.broadcast %cst_58 : f32 to vector<8x64xf32>
    %172 = arith.addf %171, %170 : vector<8x64xf32>
    %173 = arith.divf %171, %172 : vector<8x64xf32>
    %174 = vector.extract_strided_slice %167 {offsets = [0, 64], sizes = [8, 64], strides = [1, 1]} : vector<8x256xf32> to vector<8x64xf32>
    %175 = arith.negf %174 : vector<8x64xf32>
    %176 = math.exp %175 : vector<8x64xf32>
    %cst_59 = arith.constant 1.000000e+00 : f32
    %177 = vector.broadcast %cst_59 : f32 to vector<8x64xf32>
    %178 = arith.addf %177, %176 : vector<8x64xf32>
    %179 = arith.divf %177, %178 : vector<8x64xf32>
    %180 = vector.extract_strided_slice %167 {offsets = [0, 128], sizes = [8, 64], strides = [1, 1]} : vector<8x256xf32> to vector<8x64xf32>
    %181 = math.tanh %180 : vector<8x64xf32>
    %182 = vector.extract_strided_slice %167 {offsets = [0, 192], sizes = [8, 64], strides = [1, 1]} : vector<8x256xf32> to vector<8x64xf32>
    %183 = arith.negf %182 : vector<8x64xf32>
    %184 = math.exp %183 : vector<8x64xf32>
    %cst_60 = arith.constant 1.000000e+00 : f32
    %185 = vector.broadcast %cst_60 : f32 to vector<8x64xf32>
    %186 = arith.addf %185, %184 : vector<8x64xf32>
    %187 = arith.divf %185, %186 : vector<8x64xf32>
    %188 = arith.mulf %179, %160 : vector<8x64xf32>
    %189 = arith.mulf %173, %181 : vector<8x64xf32>
    %190 = arith.addf %188, %189 : vector<8x64xf32>
    %191 = math.tanh %190 : vector<8x64xf32>
    %192 = arith.mulf %187, %191 : vector<8x64xf32>
    %c8_i32_61 = arith.constant 8 : i32
    %193 = arith.muli %arg0, %c8_i32_61 : i32
    %194 = arith.addi %193, %c4_i32 : i32
    %c8_i32_62 = arith.constant 8 : i32
    %195 = arith.cmpi slt, %194, %c8_i32_62 : i32
    %196 = arith.select %195, %192, %159 : vector<8x64xf32>
    %197 = arith.select %195, %190, %160 : vector<8x64xf32>
    %c5_i32 = arith.constant 5 : i32
    %c8_i32_63 = arith.constant 8 : i32
    %198 = arith.muli %c5_i32, %c8_i32_63 : i32
    %199 = tpu.assume_multiple %198, 8 : i32
    %200 = arith.index_cast %199 : i32 to index
    %c0_64 = arith.constant 0 : index
    %201 = vector.load %arg6[%200, %c0_64] : memref<64x256xf32, #tpu.memory_space<vmem>>, vector<8x256xf32>
    %c0_65 = arith.constant 0 : index
    %c0_66 = arith.constant 0 : index
    %202 = vector.load %arg3[%c0_65, %c0_66] : memref<64x256xf32, #tpu.memory_space<vmem>>, vector<64x256xf32>
    %cst_67 = arith.constant dense<0.000000e+00> : vector<8x256xf32>
    %203 = tpu.matmul %196, %202, %cst_67 {dimension_numbers = #tpu.dot_dimension_numbers<[1], [0], [0], [1], [0, 0, 1, 1], [], []>} : vector<8x64xf32>, vector<64x256xf32>, vector<8x256xf32> -> vector<8x256xf32>
    %204 = arith.addf %201, %203 : vector<8x256xf32>
    %205 = vector.extract_strided_slice %204 {offsets = [0, 0], sizes = [8, 64], strides = [1, 1]} : vector<8x256xf32> to vector<8x64xf32>
    %206 = arith.negf %205 : vector<8x64xf32>
    %207 = math.exp %206 : vector<8x64xf32>
    %cst_68 = arith.constant 1.000000e+00 : f32
    %208 = vector.broadcast %cst_68 : f32 to vector<8x64xf32>
    %209 = arith.addf %208, %207 : vector<8x64xf32>
    %210 = arith.divf %208, %209 : vector<8x64xf32>
    %211 = vector.extract_strided_slice %204 {offsets = [0, 64], sizes = [8, 64], strides = [1, 1]} : vector<8x256xf32> to vector<8x64xf32>
    %212 = arith.negf %211 : vector<8x64xf32>
    %213 = math.exp %212 : vector<8x64xf32>
    %cst_69 = arith.constant 1.000000e+00 : f32
    %214 = vector.broadcast %cst_69 : f32 to vector<8x64xf32>
    %215 = arith.addf %214, %213 : vector<8x64xf32>
    %216 = arith.divf %214, %215 : vector<8x64xf32>
    %217 = vector.extract_strided_slice %204 {offsets = [0, 128], sizes = [8, 64], strides = [1, 1]} : vector<8x256xf32> to vector<8x64xf32>
    %218 = math.tanh %217 : vector<8x64xf32>
    %219 = vector.extract_strided_slice %204 {offsets = [0, 192], sizes = [8, 64], strides = [1, 1]} : vector<8x256xf32> to vector<8x64xf32>
    %220 = arith.negf %219 : vector<8x64xf32>
    %221 = math.exp %220 : vector<8x64xf32>
    %cst_70 = arith.constant 1.000000e+00 : f32
    %222 = vector.broadcast %cst_70 : f32 to vector<8x64xf32>
    %223 = arith.addf %222, %221 : vector<8x64xf32>
    %224 = arith.divf %222, %223 : vector<8x64xf32>
    %225 = arith.mulf %216, %197 : vector<8x64xf32>
    %226 = arith.mulf %210, %218 : vector<8x64xf32>
    %227 = arith.addf %225, %226 : vector<8x64xf32>
    %228 = math.tanh %227 : vector<8x64xf32>
    %229 = arith.mulf %224, %228 : vector<8x64xf32>
    %c8_i32_71 = arith.constant 8 : i32
    %230 = arith.muli %arg0, %c8_i32_71 : i32
    %231 = arith.addi %230, %c5_i32 : i32
    %c8_i32_72 = arith.constant 8 : i32
    %232 = arith.cmpi slt, %231, %c8_i32_72 : i32
    %233 = arith.select %232, %229, %196 : vector<8x64xf32>
    %234 = arith.select %232, %227, %197 : vector<8x64xf32>
    %c6_i32 = arith.constant 6 : i32
    %c8_i32_73 = arith.constant 8 : i32
    %235 = arith.muli %c6_i32, %c8_i32_73 : i32
    %236 = tpu.assume_multiple %235, 8 : i32
    %237 = arith.index_cast %236 : i32 to index
    %c0_74 = arith.constant 0 : index
    %238 = vector.load %arg6[%237, %c0_74] : memref<64x256xf32, #tpu.memory_space<vmem>>, vector<8x256xf32>
    %c0_75 = arith.constant 0 : index
    %c0_76 = arith.constant 0 : index
    %239 = vector.load %arg3[%c0_75, %c0_76] : memref<64x256xf32, #tpu.memory_space<vmem>>, vector<64x256xf32>
    %cst_77 = arith.constant dense<0.000000e+00> : vector<8x256xf32>
    %240 = tpu.matmul %233, %239, %cst_77 {dimension_numbers = #tpu.dot_dimension_numbers<[1], [0], [0], [1], [0, 0, 1, 1], [], []>} : vector<8x64xf32>, vector<64x256xf32>, vector<8x256xf32> -> vector<8x256xf32>
    %241 = arith.addf %238, %240 : vector<8x256xf32>
    %242 = vector.extract_strided_slice %241 {offsets = [0, 0], sizes = [8, 64], strides = [1, 1]} : vector<8x256xf32> to vector<8x64xf32>
    %243 = arith.negf %242 : vector<8x64xf32>
    %244 = math.exp %243 : vector<8x64xf32>
    %cst_78 = arith.constant 1.000000e+00 : f32
    %245 = vector.broadcast %cst_78 : f32 to vector<8x64xf32>
    %246 = arith.addf %245, %244 : vector<8x64xf32>
    %247 = arith.divf %245, %246 : vector<8x64xf32>
    %248 = vector.extract_strided_slice %241 {offsets = [0, 64], sizes = [8, 64], strides = [1, 1]} : vector<8x256xf32> to vector<8x64xf32>
    %249 = arith.negf %248 : vector<8x64xf32>
    %250 = math.exp %249 : vector<8x64xf32>
    %cst_79 = arith.constant 1.000000e+00 : f32
    %251 = vector.broadcast %cst_79 : f32 to vector<8x64xf32>
    %252 = arith.addf %251, %250 : vector<8x64xf32>
    %253 = arith.divf %251, %252 : vector<8x64xf32>
    %254 = vector.extract_strided_slice %241 {offsets = [0, 128], sizes = [8, 64], strides = [1, 1]} : vector<8x256xf32> to vector<8x64xf32>
    %255 = math.tanh %254 : vector<8x64xf32>
    %256 = vector.extract_strided_slice %241 {offsets = [0, 192], sizes = [8, 64], strides = [1, 1]} : vector<8x256xf32> to vector<8x64xf32>
    %257 = arith.negf %256 : vector<8x64xf32>
    %258 = math.exp %257 : vector<8x64xf32>
    %cst_80 = arith.constant 1.000000e+00 : f32
    %259 = vector.broadcast %cst_80 : f32 to vector<8x64xf32>
    %260 = arith.addf %259, %258 : vector<8x64xf32>
    %261 = arith.divf %259, %260 : vector<8x64xf32>
    %262 = arith.mulf %253, %234 : vector<8x64xf32>
    %263 = arith.mulf %247, %255 : vector<8x64xf32>
    %264 = arith.addf %262, %263 : vector<8x64xf32>
    %265 = math.tanh %264 : vector<8x64xf32>
    %266 = arith.mulf %261, %265 : vector<8x64xf32>
    %c8_i32_81 = arith.constant 8 : i32
    %267 = arith.muli %arg0, %c8_i32_81 : i32
    %268 = arith.addi %267, %c6_i32 : i32
    %c8_i32_82 = arith.constant 8 : i32
    %269 = arith.cmpi slt, %268, %c8_i32_82 : i32
    %270 = arith.select %269, %266, %233 : vector<8x64xf32>
    %271 = arith.select %269, %264, %234 : vector<8x64xf32>
    %c7_i32 = arith.constant 7 : i32
    %c8_i32_83 = arith.constant 8 : i32
    %272 = arith.muli %c7_i32, %c8_i32_83 : i32
    %273 = tpu.assume_multiple %272, 8 : i32
    %274 = arith.index_cast %273 : i32 to index
    %c0_84 = arith.constant 0 : index
    %275 = vector.load %arg6[%274, %c0_84] : memref<64x256xf32, #tpu.memory_space<vmem>>, vector<8x256xf32>
    %c0_85 = arith.constant 0 : index
    %c0_86 = arith.constant 0 : index
    %276 = vector.load %arg3[%c0_85, %c0_86] : memref<64x256xf32, #tpu.memory_space<vmem>>, vector<64x256xf32>
    %cst_87 = arith.constant dense<0.000000e+00> : vector<8x256xf32>
    %277 = tpu.matmul %270, %276, %cst_87 {dimension_numbers = #tpu.dot_dimension_numbers<[1], [0], [0], [1], [0, 0, 1, 1], [], []>} : vector<8x64xf32>, vector<64x256xf32>, vector<8x256xf32> -> vector<8x256xf32>
    %278 = arith.addf %275, %277 : vector<8x256xf32>
    %279 = vector.extract_strided_slice %278 {offsets = [0, 0], sizes = [8, 64], strides = [1, 1]} : vector<8x256xf32> to vector<8x64xf32>
    %280 = arith.negf %279 : vector<8x64xf32>
    %281 = math.exp %280 : vector<8x64xf32>
    %cst_88 = arith.constant 1.000000e+00 : f32
    %282 = vector.broadcast %cst_88 : f32 to vector<8x64xf32>
    %283 = arith.addf %282, %281 : vector<8x64xf32>
    %284 = arith.divf %282, %283 : vector<8x64xf32>
    %285 = vector.extract_strided_slice %278 {offsets = [0, 64], sizes = [8, 64], strides = [1, 1]} : vector<8x256xf32> to vector<8x64xf32>
    %286 = arith.negf %285 : vector<8x64xf32>
    %287 = math.exp %286 : vector<8x64xf32>
    %cst_89 = arith.constant 1.000000e+00 : f32
    %288 = vector.broadcast %cst_89 : f32 to vector<8x64xf32>
    %289 = arith.addf %288, %287 : vector<8x64xf32>
    %290 = arith.divf %288, %289 : vector<8x64xf32>
    %291 = vector.extract_strided_slice %278 {offsets = [0, 128], sizes = [8, 64], strides = [1, 1]} : vector<8x256xf32> to vector<8x64xf32>
    %292 = math.tanh %291 : vector<8x64xf32>
    %293 = vector.extract_strided_slice %278 {offsets = [0, 192], sizes = [8, 64], strides = [1, 1]} : vector<8x256xf32> to vector<8x64xf32>
    %294 = arith.negf %293 : vector<8x64xf32>
    %295 = math.exp %294 : vector<8x64xf32>
    %cst_90 = arith.constant 1.000000e+00 : f32
    %296 = vector.broadcast %cst_90 : f32 to vector<8x64xf32>
    %297 = arith.addf %296, %295 : vector<8x64xf32>
    %298 = arith.divf %296, %297 : vector<8x64xf32>
    %299 = arith.mulf %290, %271 : vector<8x64xf32>
    %300 = arith.mulf %284, %292 : vector<8x64xf32>
    %301 = arith.addf %299, %300 : vector<8x64xf32>
    %302 = math.tanh %301 : vector<8x64xf32>
    %303 = arith.mulf %298, %302 : vector<8x64xf32>
    %c8_i32_91 = arith.constant 8 : i32
    %304 = arith.muli %arg0, %c8_i32_91 : i32
    %305 = arith.addi %304, %c7_i32 : i32
    %c8_i32_92 = arith.constant 8 : i32
    %306 = arith.cmpi slt, %305, %c8_i32_92 : i32
    %307 = arith.select %306, %303, %270 : vector<8x64xf32>
    %308 = arith.select %306, %301, %271 : vector<8x64xf32>
    %c8_i32_93 = arith.constant 8 : i32
    %c0_94 = arith.constant 0 : index
    %c0_95 = arith.constant 0 : index
    %309 = vector.load %arg7[%c0_94, %c0_95] : memref<8x64xf32, #tpu.memory_space<vmem>>, vector<8x64xf32>
    tpu.vector_store %arg7[%c0_94, %c0_95], %307 {strides = array<i32>} : memref<8x64xf32, #tpu.memory_space<vmem>>, vector<8x64xf32>,
    %c0_96 = arith.constant 0 : index
    %c0_97 = arith.constant 0 : index
    %310 = vector.load %arg8[%c0_96, %c0_97] : memref<8x64xf32, #tpu.memory_space<vmem>>, vector<8x64xf32>
    tpu.vector_store %arg8[%c0_96, %c0_97], %308 {strides = array<i32>} : memref<8x64xf32, #tpu.memory_space<vmem>>, vector<8x64xf32>,
    %c0_i32_98 = arith.constant 0 : i32
    %311 = arith.cmpi eq, %arg0, %c0_i32_98 : i32
    %312 = arith.extui %311 : i1 to i32
    %c0_i32_99 = arith.constant 0 : i32
    %313 = arith.cmpi ne, %312, %c0_i32_99 : i32
    scf.if %313 {
      %c0_100 = arith.constant 0 : index
      %c0_101 = arith.constant 0 : index
      %314 = vector.load %arg5[%c0_100, %c0_101] : memref<8x64xf32, #tpu.memory_space<vmem>>, vector<8x64xf32>
      tpu.vector_store %arg5[%c0_100, %c0_101], %307 {strides = array<i32>} : memref<8x64xf32, #tpu.memory_space<vmem>>, vector<8x64xf32>,
    } else {
    }
    return
  }
  func.func @transform_0(%arg0: i32) -> (i32, i32, i32) {
    %c0_i32 = arith.constant 0 : i32
    %c0_i32_0 = arith.constant 0 : i32
    %c0_i32_1 = arith.constant 0 : i32
    return %arg0, %c0_i32, %c0_i32_0 : i32, i32, i32
  }
  func.func @transform_1(%arg0: i32) -> (i32, i32) {
    %c0_i32 = arith.constant 0 : i32
    %c0_i32_0 = arith.constant 0 : i32
    %c0_i32_1 = arith.constant 0 : i32
    return %c0_i32, %c0_i32_0 : i32, i32
  }
  func.func @transform_2(%arg0: i32) -> (i32, i32) {
    %c0_i32 = arith.constant 0 : i32
    %c0_i32_0 = arith.constant 0 : i32
    %c0_i32_1 = arith.constant 0 : i32
    return %c0_i32, %c0_i32_0 : i32, i32
  }
  func.func @transform_3(%arg0: i32) -> (i32, i32) {
    %c0_i32 = arith.constant 0 : i32
    %c0_i32_0 = arith.constant 0 : i32
    %c0_i32_1 = arith.constant 0 : i32
    return %c0_i32, %c0_i32_0 : i32, i32
  }
  func.func @transform_4(%arg0: i32) -> (i32, i32) {
    %c0_i32 = arith.constant 0 : i32
    %c0_i32_0 = arith.constant 0 : i32
    %c0_i32_1 = arith.constant 0 : i32
    return %c0_i32, %c0_i32_0 : i32, i32
  }
}

</mosaic_0001>

<bundles_post_ra>
// kernel: shared_encoder_forward.1
= control target key start
LH: loop header
LB: loop body
LE: loop exit
PB: predicated region body
PF: predicated region fallthrough
CT: control target
= control target key end

     0   :  { %9 = vsyncpa [#allocation6], 0  ;;  %s1262_s18 = smov [#allocation5]   ;;  %s1263_s20 = smov 256   ;;  %s1606_s0 = inlined_call_operand.vmem [shape: f32[8,8,16], index: 0, kind: input, shape index: {}]   ;;  %s1607_s1 = inlined_call_operand.vmem [shape: f32[16,256], index: 1, kind: input, shape index: {}]   ;;  %s1608_s2 = inlined_call_operand.hbm [shape: f32[64,256], index: 2, kind: input, shape index: {}]   ;;  %s1609_s3 = inlined_call_operand.vmem [shape: f32[1,256], index: 3, kind: input, shape index: {}]   ;;  %s1610_s4 = inlined_call_operand.vmem [shape: f32[8,64], index: 4, kind: output, shape index: {}]  }
   0x1   :  { %s18_s17 = sshll.u32 %s1608_s2, 4  ;;  %s20_s19 = sshll.u32 %s1262_s18, 4  ;;  %s19_s17 = int_to_ptr.hbm [resolvable:$true] %s18_s17  ;;  %s21_s19 = int_to_ptr.vmem [resolvable:$true] %s20_s19 }
   0x2   :  { %s1264_s21 = smov 16  }
   0x3   :  { %26 = dma.hbm_to_vmem [thread:$0]  %s19_s17, 2048, %s21_s19, [#allocation6], %s1263_s20, %s1263_s20, %s1264_s21  }
   0x4   :  { %1260 = dma.done.wait [#allocation6], 2048  }
   0x5   :  { %1261 = vsyncadd [#allocation6], 4294965248  ;;  %vm37_vm0 = vcmask 523264   ;;  %v1265_v0 = vmov 0.0   ;;  %v1297_v1 = vld [vmem:[#allocation5 + $0x70] sm:$0xff]  ;;  %v1299_v2 = vld [vmem:[#allocation5 + $0x60] sm:$0xff] }
   0x6   :  { %38 = vst.msk [vmem:[#allocation3] sm:$0xff] %vm37_vm0, %v1265_v0  ;;  %216 = vmatpush.msra.mxu2 %v1297_v1  ;;  %v1302_v3 = vld [vmem:[#allocation5 + $0x78] sm:$0xff]  ;;  %v1304_v4 = vld [vmem:[#allocation5 + $0x50] sm:$0xff]  ;;  %v1307_v5 = vld [vmem:[#allocation5 + $0x68] sm:$0xff]  ;;  %vm58_vm1 = vcmask 130048   ;;  %s1266_s5 = smov 64  }
   0x7   :  { %39 = vst.msk [vmem:[#allocation4] sm:$0xff] %vm37_vm0, %v1265_v0  ;;  %236 = vmatpush.msra.mxu3 %v1302_v3  ;;  %v1310_v6 = vld [vmem:[#allocation5 + $0x58] sm:$0xff]  ;;  %v1312_v7 = vld [vmem:[#allocation5 + $0x40] sm:$0xff]  ;;  %v1319_v9 = vld [vmem:[#allocation5 + $0x48] sm:$0xff] }
   0x8   :  { %217 = vmatpush.msra.mxu2 %v1299_v2  ;;  %v50_v8 = vld [vmem:[%s1607_s1 + $0x10] sm:$0xff]  ;;  %v48_v10 = vld [vmem:[%s1607_s1] sm:$0xff]  ;;  %v51_v13 = vld [vmem:[%s1607_s1 + $0x18] sm:$0xff] }
   0x9   :  { %237 = vmatpush.msra.mxu3 %v1307_v5  ;;  %97 = vmatpush.msra.mxu0 %v50_v8  ;;  %v40_v11 = vld [vmem:[%s1606_s0] sm:$0xff]  ;;  %v1334_v14 = vld [vmem:[#allocation5 + $0x38] sm:$0xff]  ;;  %v1336_v16 = vld [vmem:[#allocation5 + $0x20] sm:$0xff] }
   0xa   :  { %218 = vmatpush.msra.mxu2 %v1304_v4  ;;  %v1327_v12 = vld [vmem:[#allocation5 + $0x30] sm:$0xff]  ;;  %v49_v17 = vld [vmem:[%s1607_s1 + $0x8] sm:$0xff]  ;;  %v1344_v18 = vld [vmem:[#allocation5 + $0x28] sm:$0xff]  ;;  %138 = vmatpush.msra.mxu1 %v51_v13 }
   0xb   :  { %238 = vmatpush.msra.mxu3 %v1310_v6  ;;  %98 = vmatpush.msra.mxu0 %v48_v10  ;;  %v1346_v19 = vld [vmem:[#allocation5 + $0x10] sm:$0xff]  ;;  %v1351_v20 = vld [vmem:[#allocation5 + $0x18] sm:$0xff]  ;;  %v1353_v21 = vld [vmem:[#allocation5] sm:$0xff] }
   0xc   :  { %219 = vmatpush.msra.mxu2 %v1312_v7  ;;  %1087 = vmatmul.msk.f32.vlgmr.msra.gmra.mxu0 %vm58_vm1, %v40_v11  ;;  %v1358_v23 = vld [vmem:[#allocation5 + $0x8] sm:$0xff]  ;;  %v52_v24 = vld [vmem:[%s1609_s3] sm:$0x3] }
   0xd   :  { %239 = vmatpush.msra.mxu3 %v1319_v9  ;;  %139 = vmatpush.msra.mxu1 %v49_v17  ;;  %v181_v22 = vld [vmem:[#allocation3] sm:$0xff]  ;;  %v1432_v25 = vperm.slane %v52_v24, 0  ;;  %v1435_v33 = vperm.slane %v52_v24, 1 }
   0xe   :  { %v182_v15 = vld [vmem:[#allocation4] sm:$0xff]  ;;  %220 = vmatpush.msra.mxu2 %v1327_v12  ;;  %1095 = vmatmul.msk.f32.vlgmr.msra.gmra.mxu1 %vm58_vm1, %v40_v11 }
   0xf   :  { %240 = vmatpush.msra.mxu3 %v1334_v14  ;;  %290 = vrot.lane.b32.xlu0 %v182_v15, %s1266_s5  ;;  %v41_v15 = vld [vmem:[%s1606_s0 + $0x8] sm:$0xff] }
  0x10   :  { %221 = vmatpush.msra.mxu2 %v1336_v16  ;;  %651 = vmatpush.msrb.mxu0 %v1297_v1 }
  0x11   :  { %241 = vmatpush.msra.mxu3 %v1344_v18  ;;  %671 = vmatpush.msrb.mxu1 %v1302_v3 }
  0x12   :  { %222 = vmatpush.msra.mxu2 %v1346_v19  ;;  %652 = vmatpush.msrb.mxu0 %v1299_v2 }
  0x13   :  { %242 = vmatpush.msra.mxu3 %v1351_v20  ;;  %672 = vmatpush.msrb.mxu1 %v1307_v5 }
  0x14   :  { %223 = vmatpush.msra.mxu2 %v1353_v21  ;;  %653 = vmatpush.msrb.mxu0 %v1304_v4 }
  0x15   :  { %1103 = vmatmul.msk.f32.vlgmr.msra.gmra.mxu2 %vm37_vm0, %v181_v22  ;;  %243 = vmatpush.msra.mxu3 %v1358_v23 }
  0x16   :  { %1104 = vmatmul.msk.f32.vlgmr.msra.gmra.mxu3 %vm37_vm0, %v181_v22  ;;  %330 = vmatpush.msrb.mxu2 %v1297_v1 }
  0x17   :  { %350 = vmatpush.msrb.mxu3 %v1302_v3  ;;  %654 = vmatpush.msrb.mxu0 %v1312_v7 }
  0x18   :  { %331 = vmatpush.msrb.mxu2 %v1299_v2  ;;  %673 = vmatpush.msrb.mxu1 %v1310_v6 }
  0x19   :  { %351 = vmatpush.msrb.mxu3 %v1307_v5  ;;  %655 = vmatpush.msrb.mxu0 %v1327_v12 }
  0x1a   :  { %332 = vmatpush.msrb.mxu2 %v1304_v4  ;;  %674 = vmatpush.msrb.mxu1 %v1319_v9 }
  0x1b   :  { %352 = vmatpush.msrb.mxu3 %v1310_v6  ;;  %656 = vmatpush.msrb.mxu0 %v1336_v16 }
  0x1c   :  { %333 = vmatpush.msrb.mxu2 %v1312_v7  ;;  %675 = vmatpush.msrb.mxu1 %v1334_v14 }
  0x1d   :  { %353 = vmatpush.msrb.mxu3 %v1319_v9  ;;  %657 = vmatpush.msrb.mxu0 %v1346_v19 }
  0x1e   :  { %334 = vmatpush.msrb.mxu2 %v1327_v12  ;;  %676 = vmatpush.msrb.mxu1 %v1344_v18 }
  0x1f   :  { %354 = vmatpush.msrb.mxu3 %v1334_v14  ;;  %658 = vmatpush.msrb.mxu0 %v1353_v21 }
  0x20   :  { %335 = vmatpush.msrb.mxu2 %v1336_v16  ;;  %677 = vmatpush.msrb.mxu1 %v1351_v20 }
  0x21   :  { %355 = vmatpush.msrb.mxu3 %v1344_v18  ;;  %865 = vmatpush.msra.mxu0 %v1297_v1 }
  0x22   :  { %336 = vmatpush.msrb.mxu2 %v1346_v19  ;;  %678 = vmatpush.msrb.mxu1 %v1358_v23 }
  0x23   :  { %356 = vmatpush.msrb.mxu3 %v1351_v20  ;;  %866 = vmatpush.msra.mxu0 %v1299_v2 }
  0x24   :  { %337 = vmatpush.msrb.mxu2 %v1353_v21  ;;  %885 = vmatpush.msra.mxu1 %v1302_v3 }
  0x25   :  { %357 = vmatpush.msrb.mxu3 %v1358_v23  ;;  %867 = vmatpush.msra.mxu0 %v1304_v4 }
  0x26   :  { %437 = vmatpush.msra.mxu2 %v1297_v1  ;;  %886 = vmatpush.msra.mxu1 %v1307_v5 }
  0x27   :  { %457 = vmatpush.msra.mxu3 %v1302_v3  ;;  %868 = vmatpush.msra.mxu0 %v1312_v7 }
  0x28   :  { %438 = vmatpush.msra.mxu2 %v1299_v2  ;;  %887 = vmatpush.msra.mxu1 %v1310_v6 }
  0x29   :  { %458 = vmatpush.msra.mxu3 %v1307_v5  ;;  %869 = vmatpush.msra.mxu0 %v1327_v12 }
  0x2a   :  { %439 = vmatpush.msra.mxu2 %v1304_v4  ;;  %888 = vmatpush.msra.mxu1 %v1319_v9 }
  0x2b   :  { %459 = vmatpush.msra.mxu3 %v1310_v6  ;;  %870 = vmatpush.msra.mxu0 %v1336_v16 }
  0x2c   :  { %440 = vmatpush.msra.mxu2 %v1312_v7  ;;  %889 = vmatpush.msra.mxu1 %v1334_v14 }
  0x2d   :  { %460 = vmatpush.msra.mxu3 %v1319_v9  ;;  %871 = vmatpush.msra.mxu0 %v1346_v19 }
  0x2e   :  { %441 = vmatpush.msra.mxu2 %v1327_v12  ;;  %890 = vmatpush.msra.mxu1 %v1344_v18 }
  0x2f   :  { %461 = vmatpush.msra.mxu3 %v1334_v14  ;;  %872 = vmatpush.msra.mxu0 %v1353_v21 }
  0x30   :  { %442 = vmatpush.msra.mxu2 %v1336_v16  ;;  %891 = vmatpush.msra.mxu1 %v1351_v20 }
  0x31   :  { %462 = vmatpush.msra.mxu3 %v1344_v18  ;;  %1088 = vmatmul.msk.f32.gmra.mxu0 %vm58_vm1, %v41_v15 }
  0x32   :  { %443 = vmatpush.msra.mxu2 %v1346_v19  ;;  %892 = vmatpush.msra.mxu1 %v1358_v23 }
  0x33   :  { %463 = vmatpush.msra.mxu3 %v1351_v20  ;;  %1096 = vmatmul.msk.f32.gmra.mxu1 %vm58_vm1, %v41_v15 }
  0x34   :  { %444 = vmatpush.msra.mxu2 %v1353_v21 }
  0x35   :  { %464 = vmatpush.msra.mxu3 %v1358_v23 }
  0x81   :  { %v291_v55 = vpop.permute.xlu0 %290 }
  0x89   :  { %v100_v26 = vpop.f32.mrf.mxu0 }
  0x8a   :  { %v101_v27 = vadd.f32 %v100_v26, %v1432_v25 }
  0x8b   :  { %v141_v34 = vpop.f32.mrf.mxu1 }
  0x8c   :  { %v142_v35 = vadd.f32 %v141_v34, %v1435_v33 }
  0x98   :  { %v225_v28 = vpop.f32.mrf.mxu2 }
  0x99   :  { %v248_v29 = vadd.f32 %v225_v28, %v101_v27  ;;  %v245_v36 = vpop.f32.mrf.mxu3 }
  0x9a   :  { %v249_v38 = vadd.f32 %v245_v36, %v142_v35 }
  0x9b   :  { %v1105_v30 = vmul.f32 -1.442695, %v248_v29 }
  0x9c   :  { %v1106_v50 = vmul.f32 -1.442695, %v249_v38 }
  0x9d   :  { %1140 = vpow2.f32 %v1105_v30 }
  0xa3   :  { %v1141_v31 = vpop.eup %1140 }
  0xa4   :  { %v253_v32 = vadd.f32 1.0, %v1141_v31 }
  0xa6   :  { %1142 = vrcp.f32 %v253_v32  ;;  %v265_v41 = vand.u32 2147483648, %v253_v32  ;;  %v263_v43 = vand.u32 2147483647, %v253_v32  ;;  %vm259_vm3 = vweird.f32 %v253_v32 }
  0xa7   :  { %1144 = vtanh.f32 %v249_v38 }
  0xa8   :  { %v266_v46 = vor.u32 1.1754944e-38, %v265_v41  ;;  %vm264_vm5 = vcmp.eq.f32.partialorder %v263_v43, 8.507059e+37  ;;  %1146 = vpow2.f32 %v1106_v50 }
  0xac   :  { %v1143_v37 = vpop.eup %1142 }
  0xad   :  { %v255_v39 = vmul.f32 %v1143_v37, %v253_v32  ;;  %vm260_vm2 = vweird.f32 %v1143_v37  ;;  %v1145_v45 = vpop.eup %1144 }
  0xae   :  { %vm261_vm4 = vmor %vm259_vm3, %vm260_vm2  ;;  %v1147_v51 = vpop.eup %1146  ;;  %v103_v22 = vpop.f32.mrf.mxu0 }
  0xaf   :  { %v256_v40 = vsub.f32 1.0, %v255_v39  ;;  %v273_v52 = vadd.f32 1.0, %v1147_v51  ;;  %v104_v24 = vadd.f32 %v103_v22, %v1432_v25 }
  0xb0   :  { %v144_v31 = vpop.f32.mrf.mxu1 }
  0xb1   :  { %v257_v42 = vmul.f32 %v1143_v37, %v256_v40  ;;  %1148 = vrcp.f32 %v273_v52  ;;  %vm279_vm6 = vweird.f32 %v273_v52  ;;  %v285_v61 = vand.u32 2147483648, %v273_v52 }
  0xb2   :  { %v283_v63 = vand.u32 2147483647, %v273_v52  ;;  %v145_v32 = vadd.f32 %v144_v31, %v1435_v33 }
  0xb3   :  { %v258_v44 = vadd.f32 %v1143_v37, %v257_v42  ;;  %v286_v0 = vor.u32 1.1754944e-38, %v285_v61 }
  0xb4   :  { %vm284_vm9 = vcmp.eq.f32.partialorder %v283_v63, 8.507059e+37 }
  0xb5   :  { %v262_v47 = vsel %vm261_vm4, %v1143_v37, %v258_v44 }
  0xb6   :  { %v267_v48 = vsel %vm264_vm5, %v266_v46, %v262_v47 }
  0xb7   :  { %v294_v49 = vmul.f32 %v1145_v45, %v267_v48  ;;  %v1149_v53 = vpop.eup %1148  ;;  %v293_v58 = vmul.f32 %v291_v55, %v267_v48 }
  0xb8   :  { %v275_v54 = vmul.f32 %v1149_v53, %v273_v52  ;;  %vm280_vm7 = vweird.f32 %v1149_v53 }
  0xb9   :  { %296 = vrot.lane.b32.xlu0 %v294_v49, %s1266_s5  ;;  %vm281_vm8 = vmor %vm279_vm6, %vm280_vm7 }
  0xba   :  { %v276_v56 = vsub.f32 1.0, %v275_v54 }
  0xbc   :  { %v277_v57 = vmul.f32 %v1149_v53, %v276_v56 }
  0xbe   :  { %v278_v62 = vadd.f32 %v1149_v53, %v277_v57 }
  0xc0   :  { %v282_v8 = vsel %vm281_vm8, %v1149_v53, %v278_v62 }
  0xc1   :  { %v287_v11 = vsel %vm284_vm9, %v286_v0, %v282_v8 }
 0x12b   :  { %v297_v59 = vpop.permute.xlu0 %296 }
 0x12c   :  { %v1439_v60 = vadd.f32 %v297_v59, %v293_v58 }
 0x12e   :  { %1150 = vtanh.f32 %v1439_v60 }
 0x134   :  { %v1151_v10 = vpop.eup %1150 }
 0x135   :  { %v301_v13 = vmul.f32 %v1151_v10, %v287_v11 }
 0x137   :  { %318 = vrot.lane.b32.xlu1 %v301_v13, %s1266_s5 }
 0x1a9   :  { %v319_v17 = vpop.permute.xlu1 %318 }
 0x1aa   :  { %1107 = vmatmul.msk.f32.vlgmr.msrb.gmra.mxu2 %vm37_vm0, %v319_v17  ;;  %1108 = vmatmul.msk.f32.vlgmr.msrb.gmra.mxu3 %vm37_vm0, %v319_v17 }
 0x1ab   :  { %544 = vmatpush.msrb.mxu2 %v1297_v1  ;;  %564 = vmatpush.msrb.mxu3 %v1302_v3 }
 0x1ad   :  { %545 = vmatpush.msrb.mxu2 %v1299_v2  ;;  %565 = vmatpush.msrb.mxu3 %v1307_v5 }
 0x1af   :  { %546 = vmatpush.msrb.mxu2 %v1304_v4  ;;  %566 = vmatpush.msrb.mxu3 %v1310_v6 }
 0x1b1   :  { %547 = vmatpush.msrb.mxu2 %v1312_v7  ;;  %567 = vmatpush.msrb.mxu3 %v1319_v9 }
 0x1b3   :  { %548 = vmatpush.msrb.mxu2 %v1327_v12  ;;  %568 = vmatpush.msrb.mxu3 %v1334_v14 }
 0x1b5   :  { %549 = vmatpush.msrb.mxu2 %v1336_v16  ;;  %569 = vmatpush.msrb.mxu3 %v1344_v18 }
 0x1b7   :  { %550 = vmatpush.msrb.mxu2 %v1346_v19  ;;  %570 = vmatpush.msrb.mxu3 %v1351_v20 }
 0x1b9   :  { %551 = vmatpush.msrb.mxu2 %v1353_v21  ;;  %571 = vmatpush.msrb.mxu3 %v1358_v23 }
 0x22d   :  { %v339_v26 = vpop.f32.mrf.mxu2  ;;  %v359_v34 = vpop.f32.mrf.mxu3 }
 0x22e   :  { %v362_v27 = vadd.f32 %v339_v26, %v104_v24  ;;  %v363_v36 = vadd.f32 %v359_v34, %v145_v32 }
 0x230   :  { %v1109_v28 = vmul.f32 -1.442695, %v362_v27  ;;  %v1110_v48 = vmul.f32 -1.442695, %v363_v36 }
 0x232   :  { %1152 = vpow2.f32 %v1109_v28 }
 0x238   :  { %v1153_v29 = vpop.eup %1152 }
 0x239   :  { %v367_v30 = vadd.f32 1.0, %v1153_v29 }
 0x23b   :  { %1154 = vrcp.f32 %v367_v30  ;;  %v379_v39 = vand.u32 2147483648, %v367_v30  ;;  %v377_v41 = vand.u32 2147483647, %v367_v30  ;;  %vm373_vm11 = vweird.f32 %v367_v30 }
 0x23c   :  { %1156 = vtanh.f32 %v363_v36 }
 0x23d   :  { %v380_v43 = vor.u32 1.1754944e-38, %v379_v39  ;;  %vm378_vm13 = vcmp.eq.f32.partialorder %v377_v41, 8.507059e+37  ;;  %1158 = vpow2.f32 %v1110_v48 }
 0x241   :  { %v1155_v35 = vpop.eup %1154 }
 0x242   :  { %v369_v37 = vmul.f32 %v1155_v35, %v367_v30  ;;  %vm374_vm10 = vweird.f32 %v1155_v35  ;;  %v1157_v45 = vpop.eup %1156 }
 0x243   :  { %vm375_vm12 = vmor %vm373_vm11, %vm374_vm10  ;;  %v1159_v49 = vpop.eup %1158 }
 0x244   :  { %v370_v38 = vsub.f32 1.0, %v369_v37  ;;  %v387_v50 = vadd.f32 1.0, %v1159_v49 }
 0x246   :  { %v371_v40 = vmul.f32 %v1155_v35, %v370_v38  ;;  %1160 = vrcp.f32 %v387_v50  ;;  %v399_v59 = vand.u32 2147483648, %v387_v50  ;;  %vm393_vm15 = vweird.f32 %v387_v50 }
 0x247   :  { %v397_v61 = vand.u32 2147483647, %v387_v50 }
 0x248   :  { %v372_v42 = vadd.f32 %v1155_v35, %v371_v40  ;;  %v400_v63 = vor.u32 1.1754944e-38, %v399_v59 }
 0x249   :  { %vm398_vm3 = vcmp.eq.f32.partialorder %v397_v61, 8.507059e+37 }
 0x24a   :  { %v376_v44 = vsel %vm375_vm12, %v1155_v35, %v372_v42 }
 0x24b   :  { %v381_v46 = vsel %vm378_vm13, %v380_v43, %v376_v44 }
 0x24c   :  { %v404_v47 = vmul.f32 %v1157_v45, %v381_v46  ;;  %v1161_v51 = vpop.eup %1160  ;;  %v403_v55 = vmul.f32 %v381_v46, %v1439_v60  ;;  %v42_v60 = vld [vmem:[%s1606_s0 + $0x10] sm:$0xff] }
 0x24d   :  { %v389_v52 = vmul.f32 %v1161_v51, %v387_v50  ;;  %vm394_vm14 = vweird.f32 %v1161_v51  ;;  %1089 = vmatmul.msk.f32.gmra.mxu0 %vm58_vm1, %v42_v60  ;;  %1097 = vmatmul.msk.f32.gmra.mxu1 %vm58_vm1, %v42_v60 }
 0x24e   :  { %406 = vrot.lane.b32.xlu1 %v404_v47, %s1266_s5  ;;  %vm395_vm2 = vmor %vm393_vm15, %vm394_vm14 }
 0x24f   :  { %v390_v53 = vsub.f32 1.0, %v389_v52 }
 0x251   :  { %v391_v54 = vmul.f32 %v1161_v51, %v390_v53 }
 0x253   :  { %v392_v58 = vadd.f32 %v1161_v51, %v391_v54 }
 0x255   :  { %v396_v62 = vsel %vm395_vm2, %v1161_v51, %v392_v58 }
 0x256   :  { %v401_v8 = vsel %vm398_vm3, %v400_v63, %v396_v62 }
 0x2c0   :  { %v407_v56 = vpop.permute.xlu1 %406 }
 0x2c1   :  { %v1470_v57 = vadd.f32 %v407_v56, %v403_v55 }
 0x2c3   :  { %1162 = vtanh.f32 %v1470_v57 }
 0x2c9   :  { %v1163_v0 = vpop.eup %1162 }
 0x2ca   :  { %v411_v10 = vmul.f32 %v1163_v0, %v401_v8  ;;  %v106_v13 = vpop.f32.mrf.mxu0  ;;  %v147_v28 = vpop.f32.mrf.mxu1 }
 0x2cb   :  { %v107_v15 = vadd.f32 %v106_v13, %v1432_v25  ;;  %v148_v29 = vadd.f32 %v147_v28, %v1435_v33  ;;  %v44_v28 = vld [vmem:[%s1606_s0 + $0x20] sm:$0xff] }
 0x2cc   :  { %425 = vrot.lane.b32.xlu2 %v411_v10, %s1266_s5 }
 0x326   :  { %v426_v11 = vpop.permute.xlu2 %425 }
 0x327   :  { %1111 = vmatmul.msk.f32.vlgmr.msra.gmra.mxu2 %vm37_vm0, %v426_v11  ;;  %1112 = vmatmul.msk.f32.vlgmr.msra.gmra.mxu3 %vm37_vm0, %v426_v11 }
 0x328   :  { %758 = vmatpush.msra.mxu2 %v1297_v1  ;;  %778 = vmatpush.msra.mxu3 %v1302_v3 }
 0x32a   :  { %759 = vmatpush.msra.mxu2 %v1299_v2  ;;  %779 = vmatpush.msra.mxu3 %v1307_v5 }
 0x32c   :  { %760 = vmatpush.msra.mxu2 %v1304_v4  ;;  %780 = vmatpush.msra.mxu3 %v1310_v6 }
 0x32e   :  { %761 = vmatpush.msra.mxu2 %v1312_v7  ;;  %781 = vmatpush.msra.mxu3 %v1319_v9 }
 0x330   :  { %762 = vmatpush.msra.mxu2 %v1327_v12  ;;  %782 = vmatpush.msra.mxu3 %v1334_v14 }
 0x332   :  { %763 = vmatpush.msra.mxu2 %v1336_v16  ;;  %783 = vmatpush.msra.mxu3 %v1344_v18 }
 0x334   :  { %764 = vmatpush.msra.mxu2 %v1346_v19  ;;  %784 = vmatpush.msra.mxu3 %v1351_v20 }
 0x336   :  { %765 = vmatpush.msra.mxu2 %v1353_v21  ;;  %785 = vmatpush.msra.mxu3 %v1358_v23 }
 0x3aa   :  { %v446_v17 = vpop.f32.mrf.mxu2  ;;  %v466_v30 = vpop.f32.mrf.mxu3 }
 0x3ab   :  { %v469_v22 = vadd.f32 %v446_v17, %v107_v15  ;;  %v470_v32 = vadd.f32 %v466_v30, %v148_v29  ;;  %v45_v29 = vld [vmem:[%s1606_s0 + $0x28] sm:$0xff] }
 0x3ad   :  { %v1113_v24 = vmul.f32 -1.442695, %v469_v22  ;;  %v1114_v45 = vmul.f32 -1.442695, %v470_v32 }
 0x3af   :  { %1164 = vpow2.f32 %v1113_v24 }
 0x3b5   :  { %v1165_v26 = vpop.eup %1164 }
 0x3b6   :  { %v474_v27 = vadd.f32 1.0, %v1165_v26 }
 0x3b8   :  { %1166 = vrcp.f32 %v474_v27  ;;  %v486_v36 = vand.u32 2147483648, %v474_v27  ;;  %v484_v38 = vand.u32 2147483647, %v474_v27  ;;  %vm480_vm5 = vweird.f32 %v474_v27 }
 0x3b9   :  { %1168 = vtanh.f32 %v470_v32 }
 0x3ba   :  { %v487_v40 = vor.u32 1.1754944e-38, %v486_v36  ;;  %vm485_vm7 = vcmp.eq.f32.partialorder %v484_v38, 8.507059e+37  ;;  %1170 = vpow2.f32 %v1114_v45 }
 0x3be   :  { %v1167_v31 = vpop.eup %1166 }
 0x3bf   :  { %v476_v34 = vmul.f32 %v1167_v31, %v474_v27  ;;  %vm481_vm4 = vweird.f32 %v1167_v31  ;;  %v1169_v42 = vpop.eup %1168 }
 0x3c0   :  { %vm482_vm6 = vmor %vm480_vm5, %vm481_vm4  ;;  %v1171_v46 = vpop.eup %1170 }
 0x3c1   :  { %v477_v35 = vsub.f32 1.0, %v476_v34  ;;  %v494_v47 = vadd.f32 1.0, %v1171_v46  ;;  %v46_v34 = vld [vmem:[%s1606_s0 + $0x30] sm:$0xff] }
 0x3c3   :  { %v478_v37 = vmul.f32 %v1167_v31, %v477_v35  ;;  %1172 = vrcp.f32 %v494_v47  ;;  %v506_v56 = vand.u32 2147483648, %v494_v47  ;;  %vm500_vm9 = vweird.f32 %v494_v47 }
 0x3c4   :  { %v504_v58 = vand.u32 2147483647, %v494_v47 }
 0x3c5   :  { %v479_v39 = vadd.f32 %v1167_v31, %v478_v37  ;;  %v507_v61 = vor.u32 1.1754944e-38, %v506_v56 }
 0x3c6   :  { %vm505_vm11 = vcmp.eq.f32.partialorder %v504_v58, 8.507059e+37 }
 0x3c7   :  { %v483_v41 = vsel %vm482_vm6, %v1167_v31, %v479_v39 }
 0x3c8   :  { %v488_v43 = vsel %vm485_vm7, %v487_v40, %v483_v41  ;;  %v47_v40 = vld [vmem:[%s1606_s0 + $0x38] sm:$0xff] }
 0x3c9   :  { %v511_v44 = vmul.f32 %v1169_v42, %v488_v43  ;;  %v1173_v48 = vpop.eup %1172  ;;  %v510_v52 = vmul.f32 %v488_v43, %v1470_v57  ;;  %v43_v57 = vld [vmem:[%s1606_s0 + $0x18] sm:$0xff] }
 0x3ca   :  { %v496_v49 = vmul.f32 %v1173_v48, %v494_v47  ;;  %vm501_vm8 = vweird.f32 %v1173_v48  ;;  %1090 = vmatmul.msk.f32.gmra.mxu0 %vm58_vm1, %v43_v57  ;;  %1098 = vmatmul.msk.f32.gmra.mxu1 %vm58_vm1, %v43_v57 }
 0x3cb   :  { %513 = vrot.lane.b32.xlu2 %v511_v44, %s1266_s5  ;;  %vm502_vm10 = vmor %vm500_vm9, %vm501_vm8 }
 0x3cc   :  { %v497_v50 = vsub.f32 1.0, %v496_v49 }
 0x3ce   :  { %v498_v51 = vmul.f32 %v1173_v48, %v497_v50 }
 0x3d0   :  { %v499_v55 = vadd.f32 %v1173_v48, %v498_v51 }
 0x3d2   :  { %v503_v59 = vsel %vm502_vm10, %v1173_v48, %v499_v55  ;;  %1091 = vmatmul.msk.f32.gmra.mxu0 %vm58_vm1, %v44_v28  ;;  %1099 = vmatmul.msk.f32.gmra.mxu1 %vm58_vm1, %v44_v28 }
 0x3d3   :  { %v508_v63 = vsel %vm505_vm11, %v507_v61, %v503_v59 }
 0x3da   :  { %1092 = vmatmul.msk.f32.gmra.mxu0 %vm58_vm1, %v45_v29  ;;  %1100 = vmatmul.msk.f32.gmra.mxu1 %vm58_vm1, %v45_v29 }
 0x3e2   :  { %1093 = vmatmul.msk.f32.gmra.mxu0 %vm58_vm1, %v46_v34  ;;  %1101 = vmatmul.msk.f32.gmra.mxu1 %vm58_vm1, %v46_v34 }
 0x3ea   :  { %1094 = vmatmul.msk.f32.gmra.mxu0 %vm58_vm1, %v47_v40  ;;  %1102 = vmatmul.msk.f32.gmra.mxu1 %vm58_vm1, %v47_v40 }
 0x425   :  { %v514_v53 = vpop.permute.xlu2 %513 }
 0x426   :  { %v1501_v54 = vadd.f32 %v514_v53, %v510_v52 }
 0x428   :  { %1174 = vtanh.f32 %v1501_v54 }
 0x42e   :  { %v1175_v62 = vpop.eup %1174 }
 0x42f   :  { %v518_v0 = vmul.f32 %v1175_v62, %v508_v63 }
 0x431   :  { %532 = vrot.lane.b32.xlu0 %v518_v0, %s1266_s5 }
 0x4a3   :  { %v533_v8 = vpop.permute.xlu0 %532 }
 0x4a4   :  { %1115 = vmatmul.msk.f32.vlgmr.msrb.gmra.mxu2 %vm37_vm0, %v533_v8  ;;  %1116 = vmatmul.msk.f32.vlgmr.msrb.gmra.mxu3 %vm37_vm0, %v533_v8 }
 0x4a5   :  { %972 = vmatpush.msrb.mxu2 %v1297_v1  ;;  %992 = vmatpush.msrb.mxu3 %v1302_v3  ;;  %v109_v1 = vpop.f32.mrf.mxu0 }
 0x4a7   :  { %973 = vmatpush.msrb.mxu2 %v1299_v2  ;;  %993 = vmatpush.msrb.mxu3 %v1307_v5  ;;  %v110_v2 = vadd.f32 %v109_v1, %v1432_v25 }
 0x4a9   :  { %974 = vmatpush.msrb.mxu2 %v1304_v4  ;;  %994 = vmatpush.msrb.mxu3 %v1310_v6 }
 0x4ab   :  { %975 = vmatpush.msrb.mxu2 %v1312_v7  ;;  %995 = vmatpush.msrb.mxu3 %v1319_v9  ;;  %v150_v9 = vpop.f32.mrf.mxu1 }
 0x4ad   :  { %976 = vmatpush.msrb.mxu2 %v1327_v12  ;;  %996 = vmatpush.msrb.mxu3 %v1334_v14  ;;  %v151_v12 = vadd.f32 %v150_v9, %v1435_v33  ;;  %v112_v49 = vpop.f32.mrf.mxu0 }
 0x4ae   :  { %v113_v56 = vadd.f32 %v112_v49, %v1432_v25 }
 0x4af   :  { %977 = vmatpush.msrb.mxu2 %v1336_v16  ;;  %997 = vmatpush.msrb.mxu3 %v1344_v18 }
 0x4b1   :  { %978 = vmatpush.msrb.mxu2 %v1346_v19  ;;  %998 = vmatpush.msrb.mxu3 %v1351_v20 }
 0x4b3   :  { %979 = vmatpush.msrb.mxu2 %v1353_v21  ;;  %999 = vmatpush.msrb.mxu3 %v1358_v23  ;;  %v153_v51 = vpop.f32.mrf.mxu1 }
 0x4b4   :  { %v154_v8 = vadd.f32 %v153_v51, %v1435_v33 }
 0x4b5   :  { %v1558_v50 = vpop.f32.mrf.mxu0 }
 0x4bb   :  { %v1562_v53 = vpop.f32.mrf.mxu1 }
 0x4bd   :  { %v1560_v52 = vpop.f32.mrf.mxu0 }
 0x4c3   :  { %v1566_v55 = vpop.f32.mrf.mxu1 }
 0x4cb   :  { %v1569_v62 = vpop.f32.mrf.mxu1 }
 0x527   :  { %v553_v3 = vpop.f32.mrf.mxu2  ;;  %v573_v14 = vpop.f32.mrf.mxu3 }
 0x528   :  { %v576_v4 = vadd.f32 %v553_v3, %v110_v2  ;;  %v577_v18 = vadd.f32 %v573_v14, %v151_v12 }
 0x52a   :  { %v1117_v5 = vmul.f32 -1.442695, %v576_v4  ;;  %v1118_v24 = vmul.f32 -1.442695, %v577_v18 }
 0x52c   :  { %1176 = vpow2.f32 %v1117_v5 }
 0x532   :  { %v1177_v6 = vpop.eup %1176 }
 0x533   :  { %v581_v7 = vadd.f32 1.0, %v1177_v6 }
 0x535   :  { %1178 = vrcp.f32 %v581_v7  ;;  %v593_v21 = vand.u32 2147483648, %v581_v7  ;;  %v591_v10 = vand.u32 2147483647, %v581_v7  ;;  %vm587_vm13 = vweird.f32 %v581_v7 }
 0x536   :  { %1180 = vtanh.f32 %v577_v18 }
 0x537   :  { %v594_v11 = vor.u32 1.1754944e-38, %v593_v21  ;;  %vm592_vm15 = vcmp.eq.f32.partialorder %v591_v10, 8.507059e+37  ;;  %1182 = vpow2.f32 %v1118_v24 }
 0x53b   :  { %v1179_v16 = vpop.eup %1178 }
 0x53c   :  { %v583_v19 = vmul.f32 %v1179_v16, %v581_v7  ;;  %vm588_vm12 = vweird.f32 %v1179_v16  ;;  %v1181_v15 = vpop.eup %1180 }
 0x53d   :  { %vm589_vm14 = vmor %vm587_vm13, %vm588_vm12  ;;  %v1183_v26 = vpop.eup %1182 }
 0x53e   :  { %v584_v20 = vsub.f32 1.0, %v583_v19  ;;  %v601_v27 = vadd.f32 1.0, %v1183_v26 }
 0x540   :  { %v585_v23 = vmul.f32 %v1179_v16, %v584_v20  ;;  %1184 = vrcp.f32 %v601_v27  ;;  %v613_v41 = vand.u32 2147483648, %v601_v27  ;;  %vm607_vm3 = vweird.f32 %v601_v27 }
 0x541   :  { %v611_v42 = vand.u32 2147483647, %v601_v27 }
 0x542   :  { %v586_v60 = vadd.f32 %v1179_v16, %v585_v23  ;;  %v614_v44 = vor.u32 1.1754944e-38, %v613_v41 }
 0x543   :  { %vm612_vm5 = vcmp.eq.f32.partialorder %v611_v42, 8.507059e+37  ;;  %v157_v42 = vadd.f32 %v1562_v53, %v1435_v33 }
 0x544   :  { %v590_v13 = vsel %vm589_vm14, %v1179_v16, %v586_v60 }
 0x545   :  { %v595_v17 = vsel %vm592_vm15, %v594_v11, %v590_v13 }
 0x546   :  { %v618_v22 = vmul.f32 %v1181_v15, %v595_v17  ;;  %v1185_v30 = vpop.eup %1184  ;;  %v617_v36 = vmul.f32 %v595_v17, %v1501_v54  ;;  %v1564_v54 = vpop.f32.mrf.mxu0 }
 0x547   :  { %v603_v31 = vmul.f32 %v1185_v30, %v601_v27  ;;  %vm608_vm2 = vweird.f32 %v1185_v30 }
 0x548   :  { %620 = vrot.lane.b32.xlu1 %v618_v22, %s1266_s5  ;;  %vm609_vm4 = vmor %vm607_vm3, %vm608_vm2 }
 0x549   :  { %v604_v32 = vsub.f32 1.0, %v603_v31 }
 0x54b   :  { %v605_v35 = vmul.f32 %v1185_v30, %v604_v32 }
 0x54d   :  { %v606_v39 = vadd.f32 %v1185_v30, %v605_v35  ;;  %v116_v35 = vadd.f32 %v1558_v50, %v1432_v25 }
 0x54f   :  { %v610_v43 = vsel %vm609_vm4, %v1185_v30, %v606_v39 }
 0x550   :  { %v615_v46 = vsel %vm612_vm5, %v614_v44, %v610_v43 }
 0x5ba   :  { %v621_v37 = vpop.permute.xlu1 %620 }
 0x5bb   :  { %v1547_v38 = vadd.f32 %v621_v37, %v617_v36 }
 0x5bd   :  { %1186 = vtanh.f32 %v1547_v38 }
 0x5c3   :  { %v1187_v45 = vpop.eup %1186 }
 0x5c4   :  { %v625_v47 = vmul.f32 %v1187_v45, %v615_v46 }
 0x5c6   :  { %639 = vrot.lane.b32.xlu2 %v625_v47, %s1266_s5 }
 0x620   :  { %v640_v48 = vpop.permute.xlu2 %639 }
 0x621   :  { %1119 = vmatmul.msk.f32.vlgmr.msrb.gmra.mxu0 %vm37_vm0, %v640_v48  ;;  %1120 = vmatmul.msk.f32.vlgmr.msrb.gmra.mxu1 %vm37_vm0, %v640_v48 }
 0x69e   :  { %v660_v58 = vpop.f32.mrf.mxu0  ;;  %v680_v57 = vpop.f32.mrf.mxu1 }
 0x69f   :  { %v683_v59 = vadd.f32 %v660_v58, %v113_v56  ;;  %v684_v2 = vadd.f32 %v680_v57, %v154_v8 }
 0x6a1   :  { %v1121_v61 = vmul.f32 -1.442695, %v683_v59  ;;  %v1122_v20 = vmul.f32 -1.442695, %v684_v2 }
 0x6a3   :  { %1188 = vpow2.f32 %v1121_v61 }
 0x6a9   :  { %v1189_v63 = vpop.eup %1188 }
 0x6aa   :  { %v688_v0 = vadd.f32 1.0, %v1189_v63 }
 0x6ac   :  { %1190 = vrcp.f32 %v688_v0  ;;  %v700_v5 = vand.u32 2147483648, %v688_v0  ;;  %v698_v7 = vand.u32 2147483647, %v688_v0  ;;  %vm694_vm6 = vweird.f32 %v688_v0 }
 0x6ad   :  { %1192 = vtanh.f32 %v684_v2 }
 0x6ae   :  { %v701_v12 = vor.u32 1.1754944e-38, %v700_v5  ;;  %vm699_vm8 = vcmp.eq.f32.partialorder %v698_v7, 8.507059e+37  ;;  %1194 = vpow2.f32 %v1122_v20 }
 0x6b2   :  { %v1191_v1 = vpop.eup %1190 }
 0x6b3   :  { %v690_v3 = vmul.f32 %v1191_v1, %v688_v0  ;;  %vm695_vm1 = vweird.f32 %v1191_v1  ;;  %v1193_v16 = vpop.eup %1192 }
 0x6b4   :  { %vm696_vm7 = vmor %vm694_vm6, %vm695_vm1  ;;  %v1195_v21 = vpop.eup %1194 }
 0x6b5   :  { %v691_v4 = vsub.f32 1.0, %v690_v3  ;;  %v708_v23 = vadd.f32 1.0, %v1195_v21  ;;  %v119_v21 = vadd.f32 %v1560_v52, %v1432_v25 }
 0x6b7   :  { %v692_v6 = vmul.f32 %v1191_v1, %v691_v4  ;;  %1196 = vrcp.f32 %v708_v23  ;;  %v720_v26 = vand.u32 2147483648, %v708_v23  ;;  %vm714_vm10 = vweird.f32 %v708_v23 }
 0x6b8   :  { %v718_v27 = vand.u32 2147483647, %v708_v23 }
 0x6b9   :  { %v693_v9 = vadd.f32 %v1191_v1, %v692_v6  ;;  %v721_v29 = vor.u32 1.1754944e-38, %v720_v26 }
 0x6ba   :  { %vm719_vm12 = vcmp.eq.f32.partialorder %v718_v27, 8.507059e+37 }
 0x6bb   :  { %v697_v14 = vsel %vm696_vm7, %v1191_v1, %v693_v9 }
 0x6bc   :  { %v702_v18 = vsel %vm699_vm8, %v701_v12, %v697_v14 }
 0x6bd   :  { %v725_v19 = vmul.f32 %v1193_v16, %v702_v18  ;;  %v1197_v10 = vpop.eup %1196  ;;  %v724_v15 = vmul.f32 %v702_v18, %v1547_v38 }
 0x6be   :  { %v710_v60 = vmul.f32 %v1197_v10, %v708_v23  ;;  %vm715_vm9 = vweird.f32 %v1197_v10 }
 0x6bf   :  { %727 = vrot.lane.b32.xlu0 %v725_v19, %s1266_s5  ;;  %vm716_vm11 = vmor %vm714_vm10, %vm715_vm9 }
 0x6c0   :  { %v711_v11 = vsub.f32 1.0, %v710_v60 }
 0x6c2   :  { %v712_v13 = vmul.f32 %v1197_v10, %v711_v11 }
 0x6c4   :  { %v713_v24 = vadd.f32 %v1197_v10, %v712_v13 }
 0x6c6   :  { %v717_v28 = vsel %vm716_vm11, %v1197_v10, %v713_v24 }
 0x6c7   :  { %v722_v31 = vsel %vm719_vm12, %v721_v29, %v717_v28 }
 0x731   :  { %v728_v17 = vpop.permute.xlu0 %727 }
 0x732   :  { %v730_v22 = vadd.f32 %v728_v17, %v724_v15  ;;  %v160_v17 = vadd.f32 %v1566_v55, %v1435_v33 }
 0x734   :  { %1198 = vtanh.f32 %v730_v22 }
 0x73a   :  { %v1199_v30 = vpop.eup %1198 }
 0x73b   :  { %v732_v32 = vmul.f32 %v1199_v30, %v722_v31 }
 0x73d   :  { %746 = vrot.lane.b32.xlu1 %v732_v32, %s1266_s5 }
 0x7af   :  { %v747_v34 = vpop.permute.xlu1 %746 }
 0x7b0   :  { %1123 = vmatmul.msk.f32.vlgmr.msra.gmra.mxu2 %vm37_vm0, %v747_v34  ;;  %1124 = vmatmul.msk.f32.vlgmr.msra.gmra.mxu3 %vm37_vm0, %v747_v34 }
 0x833   :  { %v767_v36 = vpop.f32.mrf.mxu2  ;;  %v787_v41 = vpop.f32.mrf.mxu3 }
 0x834   :  { %v790_v37 = vadd.f32 %v767_v36, %v116_v35  ;;  %v791_v44 = vadd.f32 %v787_v41, %v157_v42 }
 0x836   :  { %v1125_v38 = vmul.f32 -1.442695, %v790_v37  ;;  %v1126_v53 = vmul.f32 -1.442695, %v791_v44 }
 0x838   :  { %1200 = vpow2.f32 %v1125_v38 }
 0x83e   :  { %v1201_v39 = vpop.eup %1200 }
 0x83f   :  { %v795_v40 = vadd.f32 1.0, %v1201_v39 }
 0x841   :  { %1202 = vrcp.f32 %v795_v40  ;;  %v807_v47 = vand.u32 2147483648, %v795_v40  ;;  %v805_v49 = vand.u32 2147483647, %v795_v40  ;;  %vm801_vm14 = vweird.f32 %v795_v40 }
 0x842   :  { %1204 = vtanh.f32 %v791_v44 }
 0x843   :  { %v808_v51 = vor.u32 1.1754944e-38, %v807_v47  ;;  %vm806_vm2 = vcmp.eq.f32.partialorder %v805_v49, 8.507059e+37  ;;  %1206 = vpow2.f32 %v1126_v53 }
 0x847   :  { %v1203_v43 = vpop.eup %1202 }
 0x848   :  { %v797_v45 = vmul.f32 %v1203_v43, %v795_v40  ;;  %vm802_vm13 = vweird.f32 %v1203_v43  ;;  %v1205_v58 = vpop.eup %1204 }
 0x849   :  { %vm803_vm15 = vmor %vm801_vm14, %vm802_vm13  ;;  %v1207_v63 = vpop.eup %1206 }
 0x84a   :  { %v798_v46 = vsub.f32 1.0, %v797_v45  ;;  %v815_v0 = vadd.f32 1.0, %v1207_v63 }
 0x84c   :  { %v799_v48 = vmul.f32 %v1203_v43, %v798_v46  ;;  %1208 = vrcp.f32 %v815_v0  ;;  %v827_v7 = vand.u32 2147483648, %v815_v0  ;;  %vm821_vm4 = vweird.f32 %v815_v0 }
 0x84d   :  { %v825_v9 = vand.u32 2147483647, %v815_v0 }
 0x84e   :  { %v800_v50 = vadd.f32 %v1203_v43, %v799_v48  ;;  %v828_v14 = vor.u32 1.1754944e-38, %v827_v7 }
 0x84f   :  { %vm826_vm1 = vcmp.eq.f32.partialorder %v825_v9, 8.507059e+37 }
 0x850   :  { %v804_v56 = vsel %vm803_vm15, %v1203_v43, %v800_v50 }
 0x851   :  { %v809_v59 = vsel %vm806_vm2, %v808_v51, %v804_v56 }
 0x852   :  { %v832_v61 = vmul.f32 %v1205_v58, %v809_v59  ;;  %v1209_v57 = vpop.eup %1208  ;;  %v831_v3 = vmul.f32 %v809_v59, %v730_v22 }
 0x853   :  { %v817_v8 = vmul.f32 %v1209_v57, %v815_v0  ;;  %vm822_vm3 = vweird.f32 %v1209_v57 }
 0x854   :  { %834 = vrot.lane.b32.xlu2 %v832_v61, %s1266_s5  ;;  %vm823_vm5 = vmor %vm821_vm4, %vm822_vm3  ;;  %v122_v61 = vadd.f32 %v1564_v54, %v1432_v25 }
 0x855   :  { %v818_v1 = vsub.f32 1.0, %v817_v8 }
 0x857   :  { %v819_v2 = vmul.f32 %v1209_v57, %v818_v1 }
 0x859   :  { %v820_v6 = vadd.f32 %v1209_v57, %v819_v2  ;;  %v163_v2 = vadd.f32 %v1569_v62, %v1435_v33 }
 0x85b   :  { %v824_v12 = vsel %vm823_vm5, %v1209_v57, %v820_v6 }
 0x85c   :  { %v829_v18 = vsel %vm826_vm1, %v828_v14, %v824_v12 }
 0x8ae   :  { %v835_v4 = vpop.permute.xlu2 %834 }
 0x8af   :  { %v837_v5 = vadd.f32 %v835_v4, %v831_v3 }
 0x8b1   :  { %1210 = vtanh.f32 %v837_v5 }
 0x8b7   :  { %v1211_v16 = vpop.eup %1210 }
 0x8b8   :  { %v839_v19 = vmul.f32 %v1211_v16, %v829_v18 }
 0x8ba   :  { %853 = vrot.lane.b32.xlu0 %v839_v19, %s1266_s5 }
 0x92c   :  { %v854_v20 = vpop.permute.xlu0 %853 }
 0x92d   :  { %1127 = vmatmul.msk.f32.vlgmr.msra.gmra.mxu0 %vm37_vm0, %v854_v20  ;;  %1128 = vmatmul.msk.f32.vlgmr.msra.gmra.mxu1 %vm37_vm0, %v854_v20 }
 0x9aa   :  { %v874_v23 = vpop.f32.mrf.mxu0  ;;  %v894_v15 = vpop.f32.mrf.mxu1 }
 0x9ab   :  { %v897_v10 = vadd.f32 %v874_v23, %v119_v21  ;;  %v898_v24 = vadd.f32 %v894_v15, %v160_v17 }
 0x9ad   :  { %v1129_v60 = vmul.f32 -1.442695, %v897_v10  ;;  %v1130_v55 = vmul.f32 -1.442695, %v898_v24 }
 0x9af   :  { %1212 = vpow2.f32 %v1129_v60 }
 0x9b5   :  { %v1213_v11 = vpop.eup %1212 }
 0x9b6   :  { %v902_v13 = vadd.f32 1.0, %v1213_v11 }
 0x9b8   :  { %1214 = vrcp.f32 %v902_v13  ;;  %v914_v28 = vand.u32 2147483648, %v902_v13  ;;  %v912_v52 = vand.u32 2147483647, %v902_v13  ;;  %vm908_vm7 = vweird.f32 %v902_v13 }
 0x9b9   :  { %1216 = vtanh.f32 %v898_v24 }
 0x9ba   :  { %v915_v31 = vor.u32 1.1754944e-38, %v914_v28  ;;  %vm913_vm9 = vcmp.eq.f32.partialorder %v912_v52, 8.507059e+37  ;;  %1218 = vpow2.f32 %v1130_v55 }
 0x9be   :  { %v1215_v22 = vpop.eup %1214 }
 0x9bf   :  { %v904_v26 = vmul.f32 %v1215_v22, %v902_v13  ;;  %vm909_vm6 = vweird.f32 %v1215_v22  ;;  %v1217_v34 = vpop.eup %1216 }
 0x9c0   :  { %vm910_vm8 = vmor %vm908_vm7, %vm909_vm6  ;;  %v1219_v37 = vpop.eup %1218 }
 0x9c1   :  { %v905_v27 = vsub.f32 1.0, %v904_v26  ;;  %v922_v38 = vadd.f32 1.0, %v1219_v37 }
 0x9c3   :  { %v906_v29 = vmul.f32 %v1215_v22, %v905_v27  ;;  %1220 = vrcp.f32 %v922_v38  ;;  %v934_v47 = vand.u32 2147483648, %v922_v38  ;;  %vm928_vm11 = vweird.f32 %v922_v38 }
 0x9c4   :  { %v932_v48 = vand.u32 2147483647, %v922_v38 }
 0x9c5   :  { %v907_v30 = vadd.f32 %v1215_v22, %v906_v29  ;;  %v935_v50 = vor.u32 1.1754944e-38, %v934_v47 }
 0x9c6   :  { %vm933_vm13 = vcmp.eq.f32.partialorder %v932_v48, 8.507059e+37 }
 0x9c7   :  { %v911_v32 = vsel %vm910_vm8, %v1215_v22, %v907_v30 }
 0x9c8   :  { %v916_v35 = vsel %vm913_vm9, %v915_v31, %v911_v32 }
 0x9c9   :  { %v939_v36 = vmul.f32 %v1217_v34, %v916_v35  ;;  %v1221_v39 = vpop.eup %1220  ;;  %v938_v43 = vmul.f32 %v916_v35, %v837_v5 }
 0x9ca   :  { %v924_v40 = vmul.f32 %v1221_v39, %v922_v38  ;;  %vm929_vm10 = vweird.f32 %v1221_v39 }
 0x9cb   :  { %941 = vrot.lane.b32.xlu1 %v939_v36, %s1266_s5  ;;  %vm930_vm12 = vmor %vm928_vm11, %vm929_vm10 }
 0x9cc   :  { %v925_v41 = vsub.f32 1.0, %v924_v40 }
 0x9ce   :  { %v926_v42 = vmul.f32 %v1221_v39, %v925_v41 }
 0x9d0   :  { %v927_v46 = vadd.f32 %v1221_v39, %v926_v42 }
 0x9d2   :  { %v931_v49 = vsel %vm930_vm12, %v1221_v39, %v927_v46 }
 0x9d3   :  { %v936_v56 = vsel %vm933_vm13, %v935_v50, %v931_v49 }
 0xa3d   :  { %v942_v44 = vpop.permute.xlu1 %941 }
 0xa3e   :  { %v944_v45 = vadd.f32 %v942_v44, %v938_v43 }
 0xa40   :  { %1222 = vtanh.f32 %v944_v45 }
 0xa46   :  { %v1223_v51 = vpop.eup %1222 }
 0xa47   :  { %v946_v58 = vmul.f32 %v1223_v51, %v936_v56 }
 0xa49   :  { %960 = vrot.lane.b32.xlu2 %v946_v58, %s1266_s5 }
 0xaa3   :  { %v961_v59 = vpop.permute.xlu2 %960 }
 0xaa4   :  { %1131 = vmatmul.msk.f32.vlgmr.msrb.gmra.mxu2 %vm37_vm0, %v961_v59  ;;  %1132 = vmatmul.msk.f32.vlgmr.msrb.gmra.mxu3 %vm37_vm0, %v961_v59 }
 0xb27   :  { %v981_v53 = vpop.f32.mrf.mxu2  ;;  %v1001_v1 = vpop.f32.mrf.mxu3 }
 0xb28   :  { %v1004_v63 = vadd.f32 %v981_v53, %v122_v61  ;;  %v1005_v4 = vadd.f32 %v1001_v1, %v163_v2 }
 0xb2a   :  { %v1133_v0 = vmul.f32 -1.442695, %v1004_v63  ;;  %v1134_v33 = vmul.f32 -1.442695, %v1005_v4 }
 0xb2c   :  { %1224 = vpow2.f32 %v1133_v0 }
 0xb32   :  { %v1225_v57 = vpop.eup %1224 }
 0xb33   :  { %v1009_v8 = vadd.f32 1.0, %v1225_v57 }
 0xb35   :  { %1226 = vrcp.f32 %v1009_v8  ;;  %v1021_v7 = vand.u32 2147483648, %v1009_v8  ;;  %v1019_v25 = vand.u32 2147483647, %v1009_v8  ;;  %vm1015_vm15 = vweird.f32 %v1009_v8 }
 0xb36   :  { %1228 = vtanh.f32 %v1005_v4 }
 0xb37   :  { %v1022_v12 = vor.u32 1.1754944e-38, %v1021_v7  ;;  %vm1020_vm3 = vcmp.eq.f32.partialorder %v1019_v25, 8.507059e+37  ;;  %1230 = vpow2.f32 %v1134_v33 }
 0xb3b   :  { %v1227_v3 = vpop.eup %1226 }
 0xb3c   :  { %v1011_v5 = vmul.f32 %v1227_v3, %v1009_v8  ;;  %vm1016_vm14 = vweird.f32 %v1227_v3  ;;  %v1229_v16 = vpop.eup %1228 }
 0xb3d   :  { %vm1017_vm2 = vmor %vm1015_vm15, %vm1016_vm14  ;;  %v1231_v62 = vpop.eup %1230 }
 0xb3e   :  { %v1012_v6 = vsub.f32 1.0, %v1011_v5  ;;  %v1029_v20 = vadd.f32 1.0, %v1231_v62 }
 0xb40   :  { %v1013_v9 = vmul.f32 %v1227_v3, %v1012_v6  ;;  %1232 = vrcp.f32 %v1029_v20  ;;  %v1041_v22 = vand.u32 2147483648, %v1029_v20  ;;  %vm1035_vm5 = vweird.f32 %v1029_v20 }
 0xb41   :  { %v1039_v24 = vand.u32 2147483647, %v1029_v20 }
 0xb42   :  { %v1014_v54 = vadd.f32 %v1227_v3, %v1013_v9  ;;  %v1042_v27 = vor.u32 1.1754944e-38, %v1041_v22 }
 0xb43   :  { %vm1040_vm6 = vcmp.eq.f32.partialorder %v1039_v24, 8.507059e+37 }
 0xb44   :  { %v1018_v14 = vsel %vm1017_vm2, %v1227_v3, %v1014_v54 }
 0xb45   :  { %v1023_v18 = vsel %vm1020_vm3, %v1022_v12, %v1018_v14 }
 0xb46   :  { %v1046_v19 = vmul.f32 %v1229_v16, %v1023_v18  ;;  %v1233_v21 = vpop.eup %1232  ;;  %v1045_v11 = vmul.f32 %v1023_v18, %v944_v45 }
 0xb47   :  { %v1031_v23 = vmul.f32 %v1233_v21, %v1029_v20  ;;  %vm1036_vm4 = vweird.f32 %v1233_v21 }
 0xb48   :  { %1048 = vrot.lane.b32.xlu0 %v1046_v19, %s1266_s5  ;;  %vm1037_vm1 = vmor %vm1035_vm5, %vm1036_vm4 }
 0xb49   :  { %v1032_v10 = vsub.f32 1.0, %v1031_v23 }
 0xb4b   :  { %v1033_v60 = vmul.f32 %v1233_v21, %v1032_v10 }
 0xb4d   :  { %v1034_v17 = vadd.f32 %v1233_v21, %v1033_v60 }
 0xb4f   :  { %v1038_v26 = vsel %vm1037_vm1, %v1233_v21, %v1034_v17 }
 0xb50   :  { %v1043_v29 = vsel %vm1040_vm6, %v1042_v27, %v1038_v26 }
 0xbba   :  { %v1049_v13 = vpop.permute.xlu0 %1048 }
 0xbbb   :  { %v1051_v15 = vadd.f32 %v1049_v13, %v1045_v11 }
 0xbbd   :  { %1234 = vtanh.f32 %v1051_v15  ;;  %1067 = vrot.lane.b32.xlu2 %v1051_v15, %s1266_s5 }
 0xbc3   :  { %v1235_v28 = vpop.eup %1234 }
 0xbc4   :  { %v1053_v52 = vmul.f32 %v1235_v28, %v1043_v29 }
 0xbc6   :  { %1062 = vrot.lane.b32.xlu1 %v1053_v52, %s1266_s5 }
 0xc17   :  { %v1068_v30 = vpop.permute.xlu2 %1067 }
 0xc18   :  { %1070 = vst.msk [vmem:[#allocation4] sm:$0xff] %vm37_vm0, %v1068_v30 }
 0xc38   :  { %v1063_v31 = vpop.permute.xlu1 %1062 }
 0xc39   :  { %1065 = vst.msk [vmem:[#allocation3] sm:$0xff] %vm37_vm0, %v1063_v31 }
 0xc3a   :  { %1074 = vst.msk [vmem:[%s1610_s4] sm:$0xff] %vm37_vm0, %v1063_v31 }
 0xc3b   :  { %1079 = vsyncpa [#allocation6], 1 }

</bundles_post_ra>
